<compile_context>
chip_gen: v7x
topology: tpu7x:2x2x1
jax: 0.10.0
libtpu: 0.0.40
codegen_flags: <defaults>
</compile_context>

<pallas_src>
import math
from functools import partial

import jax
import jax.numpy as jnp
from jax.experimental import pallas as pl
from jax.experimental.pallas import tpu as pltpu


def _round_up(x, m):
    return (x + m - 1) // m * m


def _num_tensorcores():
    """Per-chip TensorCore count: 2 on v7x (and megacore v4/v5p), 1 on v5e/v6e."""
    try:
        kind = str(getattr(jax.devices()[0], "device_kind", "")).lower()
    except Exception:
        return 1
    if ("v7" in kind) or ("v4" in kind) or ("v5p" in kind):
        return 2
    return 1


# ----------------------------- Pallas kernel ------------------------------- #

def fcnet_kernel(*refs, n_layers):
    """refs = (x_ref, w0, b0, w1, b1, ..., w{L-1}, b{L-1}, out_ref).

    h = x
    for i < L-1:  h = relu(bf16(h) @ w_i + b_i)      # f32 MXU accumulation
    out = bf16(h) @ w_{L-1} + b_{L-1}                # last layer: no ReLU
    """
    x_ref = refs[0]
    out_ref = refs[-1]

    h = x_ref[...]                                   # (TM, d_in) f32
    for i in range(n_layers):
        w = refs[1 + 2 * i][...]                     # (in, out) bf16
        b = refs[2 + 2 * i][...]                     # (1, out)  f32
        h = jnp.dot(h.astype(jnp.bfloat16), w,
                    preferred_element_type=jnp.float32) + b
        if i < n_layers - 1:                         # hidden layers only
            h = jnp.maximum(h, 0.0)                  # ReLU in f32
    out_ref[...] = h.astype(out_ref.dtype)           # bf16 lane-dense writeback


# ------------------------------ host wrapper -------------------------------- #

def fcnet_forward(img, params, *, out_dtype=jnp.float32):
    """img: (B, C, H, W) float32; params: list of (W_t, b), W_t = (in, out)."""
    B = img.shape[0]
    x = img.reshape(B, -1).astype(jnp.float32)       # matches img.view(B, -1)
    d_image = x.shape[1]
    n_layers = len(params)
    n_class = params[-1][0].shape[1]

    # --- lane-dense output: zero-pad the last layer to a multiple of 128 ----
    n_out_pad = _round_up(n_class, 128)
    w_last, b_last = params[-1]
    pad_cols = n_out_pad - n_class
    if pad_cols:
        w_last = jnp.pad(w_last, ((0, 0), (0, pad_cols)))   # padded cols == 0
        b_last = jnp.pad(b_last, ((0, pad_cols),))
    prepped = list(params[:-1]) + [(w_last, b_last)]

    # --- core-count-aware batch tiling ---------------------------------------
    # Pad the batch only to a multiple of 8 (usually a no-op), then choose tm
    # as a divisor of B_pad so no extra padding copy of x is ever made.
    B_pad = _round_up(B, 8)
    if B_pad != B:
        x = jnp.pad(x, ((0, B_pad - B), (0, 0)))
    num_tc = _num_tensorcores()
    if num_tc >= 2:
        # keep >= num_tc grid steps so "parallel" shards batch across both TCs
        target_tm = max(128, _round_up(pl.cdiv(B_pad, num_tc), 8))
    else:
        # single TC: one big tile -> one grid step (no per-step overhead)
        target_tm = 512
    target_tm = min(target_tm, B_pad)
    tm = max(8, (target_tm // 8) * 8)
    while B_pad % tm:                                 # tm must divide B_pad
        tm -= 8
    grid = (B_pad // tm,)

    # --- weights stay VMEM-resident (constant index map), single-buffered ----
    resident = pl.Buffered(1)
    flat_args = [x]
    in_specs = [pl.BlockSpec((tm, d_image), lambda i: (i, 0))]
    flops = 0
    for (w_t, b) in prepped:
        w_bf16 = w_t.astype(jnp.bfloat16)            # halve weight HBM traffic
        b2 = b.reshape(1, -1).astype(jnp.float32)
        flat_args += [w_bf16, b2]
        in_specs += [
            pl.BlockSpec(w_bf16.shape, lambda i: (0, 0), pipeline_mode=resident),
            pl.BlockSpec(b2.shape, lambda i: (0, 0), pipeline_mode=resident),
        ]
        flops += 2 * B_pad * w_t.shape[0] * w_t.shape[1]

    # --- VMEM budget (explicit, so v7x's smaller VMEM is respected) ----------
    max_width = max(w.shape[1] for (w, _) in prepped)
    vmem_need = (
        2 * tm * d_image * 4                          # x tile, double-buffered f32
        + 2 * tm * n_out_pad * 2                      # out tile, double-buffered bf16
        + sum(w.shape[0] * w.shape[1] * 2 + w.shape[1] * 4
              for (w, _) in prepped)                  # resident weights/biases
        + 2 * tm * max(max_width, d_image) * 4        # f32 activation headroom
    )
    vmem_limit = int(min(48 << 20, max(16 << 20, 2 * vmem_need)))

    bytes_accessed = sum(int(a.size) * a.dtype.itemsize for a in flat_args)
    bytes_accessed += B_pad * n_out_pad * 2           # bf16 output
    out_shape = jax.ShapeDtypeStruct((B_pad, n_out_pad), jnp.bfloat16)

    out = pl.pallas_call(
        partial(fcnet_kernel, n_layers=n_layers),
        grid=grid,
        in_specs=in_specs,
        out_specs=pl.BlockSpec((tm, n_out_pad), lambda i: (i, 0)),
        out_shape=out_shape,
        compiler_params=pltpu.CompilerParams(
            dimension_semantics=("parallel",),        # v7x: shard over both TCs
            vmem_limit_bytes=vmem_limit),
        cost_estimate=pl.CostEstimate(
            flops=int(flops), transcendentals=0,
            bytes_accessed=int(bytes_accessed)),
    )(*flat_args)

    # drop batch & lane padding; restore f32 output dtype of the torch module
    return out[:B, :n_class].astype(out_dtype)


# --------------------------- parameter construction ------------------------- #

def init_fcnet_params(key, d_image, n_class, n_fc, width):
    """Deterministic init mirroring nn.Linear default U(-1/sqrt(fan_in), +)."""
    n_middle = n_fc - 2
    dims = [d_image] + [width] * (n_middle + 1) + [n_class]
    params = []
    for i in range(len(dims) - 1):
        fan_in, fan_out = dims[i], dims[i + 1]
        key, kw, kb = jax.random.split(key, 3)
        bound = 1.0 / math.sqrt(fan_in)
        # stored pre-transposed: (in, out), equivalent to torch weight.T
        w_t = jax.random.uniform(kw, (fan_in, fan_out), jnp.float32,
                                 minval=-bound, maxval=bound)
        b = jax.random.uniform(kb, (fan_out,), jnp.float32,
                               minval=-bound, maxval=bound)
        params.append((w_t, b))
    return params


def fcnet_reference(img, params):
    """Pure-JAX reference with the same bf16-operand / f32-accumulate math."""
    h = img.reshape(img.shape[0], -1).astype(jnp.float32)
    for i, (w_t, b) in enumerate(params):
        h = jnp.dot(h.astype(jnp.bfloat16), w_t.astype(jnp.bfloat16),
                    preferred_element_type=jnp.float32) + b
        if i < len(params) - 1:
            h = jnp.maximum(h, 0.0)
    return h


# ---------------------------------- main ------------------------------------ #

if __name__ == "__main__":
    # Instantiation:
    #   img (NCHW) = (256, 4, 16, 16)  ->  d_image = 4*16*16 = 1024
    #   n_fc = 4 (n_middle = 2 hidden Linear(width,width) layers)
    #   width = 128, n_class = 10, act = 'relu'
    # On single-TC chips (v5e/v6e) this runs as one 256-row tile (grid=(1,));
    # on dual-TC chips (v7x) it runs as two 128-row tiles sharded across cores.
    B, C, H, W = 256, 4, 16, 16
    d_image = C * H * W
    n_class = 10
    n_fc = 4
    width = 128

    key = jax.random.PRNGKey(0)
    key, k_img = jax.random.split(key)
    img = jax.random.normal(k_img, (B, C, H, W), jnp.float32)

    params = init_fcnet_params(key, d_image, n_class, n_fc, width)

    out = fcnet_forward(img, params)
    out = jax.block_until_ready(out)

    ref = fcnet_reference(img, params)
    assert out.shape == (B, n_class), out.shape
    assert jnp.allclose(out, ref, atol=2e-2, rtol=2e-2), \
        float(jnp.max(jnp.abs(out - ref)))

    print("KERNEL_OK")
</pallas_src>

<mosaic_0001>
module attributes {stable_mosaic.version = 11 : i64} {
  func.func @fcnet_kernel(%arg0: i32, %arg1: memref<256x1024xf32, #tpu.memory_space<vmem>>, %arg2: memref<1024x128xbf16, #tpu.memory_space<vmem>>, %arg3: memref<1x128xf32, #tpu.memory_space<vmem>>, %arg4: memref<128x128xbf16, #tpu.memory_space<vmem>>, %arg5: memref<1x128xf32, #tpu.memory_space<vmem>>, %arg6: memref<128x128xbf16, #tpu.memory_space<vmem>>, %arg7: memref<1x128xf32, #tpu.memory_space<vmem>>, %arg8: memref<128x128xbf16, #tpu.memory_space<vmem>>, %arg9: memref<1x128xf32, #tpu.memory_space<vmem>>, %arg10: memref<256x128xbf16, #tpu.memory_space<vmem>>) attributes {dimension_semantics = [#tpu.dimension_semantics<parallel>], iteration_bounds = array<i64: 1>, scalar_prefetch = 0 : i64, scratch_operands = 0 : i64, tpu.core_type = #tpu.core_type<tc>, window_params = [{transform_indices = @transform_0, window_bounds = array<i64: 256, 1024>}, {pipeline_mode = #tpu.pipeline_mode<synchronous>, transform_indices = @transform_1, window_bounds = array<i64: 1024, 128>}, {pipeline_mode = #tpu.pipeline_mode<synchronous>, transform_indices = @transform_2, window_bounds = array<i64: 1, 128>}, {pipeline_mode = #tpu.pipeline_mode<synchronous>, transform_indices = @transform_3, window_bounds = array<i64: 128, 128>}, {pipeline_mode = #tpu.pipeline_mode<synchronous>, transform_indices = @transform_4, window_bounds = array<i64: 1, 128>}, {pipeline_mode = #tpu.pipeline_mode<synchronous>, transform_indices = @transform_5, window_bounds = array<i64: 128, 128>}, {pipeline_mode = #tpu.pipeline_mode<synchronous>, transform_indices = @transform_6, window_bounds = array<i64: 1, 128>}, {pipeline_mode = #tpu.pipeline_mode<synchronous>, transform_indices = @transform_7, window_bounds = array<i64: 128, 128>}, {pipeline_mode = #tpu.pipeline_mode<synchronous>, transform_indices = @transform_8, window_bounds = array<i64: 1, 128>}, {transform_indices = @transform_9, window_bounds = array<i64: 256, 128>}]} {
    %c0 = arith.constant 0 : index
    %c0_0 = arith.constant 0 : index
    %0 = vector.load %arg1[%c0, %c0_0] : memref<256x1024xf32, #tpu.memory_space<vmem>>, vector<256x1024xf32>
    %c0_1 = arith.constant 0 : index
    %c0_2 = arith.constant 0 : index
    %1 = vector.load %arg2[%c0_1, %c0_2] : memref<1024x128xbf16, #tpu.memory_space<vmem>>, vector<1024x128xbf16>
    %c0_3 = arith.constant 0 : index
    %c0_4 = arith.constant 0 : index
    %2 = vector.load %arg3[%c0_3, %c0_4] : memref<1x128xf32, #tpu.memory_space<vmem>>, vector<1x128xf32>
    %3 = arith.truncf %0 : vector<256x1024xf32> to vector<256x1024xbf16>
    %cst = arith.constant dense<0.000000e+00> : vector<256x128xf32>
    %4 = tpu.matmul %3, %1, %cst {dimension_numbers = #tpu.dot_dimension_numbers<[1], [0], [0], [1], [0, 0, 1, 1], [], []>} : vector<256x1024xbf16>, vector<1024x128xbf16>, vector<256x128xf32> -> vector<256x128xf32>
    %5 = vector.broadcast %2 : vector<1x128xf32> to vector<256x128xf32>
    %6 = arith.addf %4, %5 : vector<256x128xf32>
    %cst_5 = arith.constant 0.000000e+00 : f32
    %7 = vector.broadcast %cst_5 : f32 to vector<256x128xf32>
    %8 = arith.maximumf %6, %7 : vector<256x128xf32>
    %c0_6 = arith.constant 0 : index
    %c0_7 = arith.constant 0 : index
    %9 = vector.load %arg4[%c0_6, %c0_7] : memref<128x128xbf16, #tpu.memory_space<vmem>>, vector<128x128xbf16>
    %c0_8 = arith.constant 0 : index
    %c0_9 = arith.constant 0 : index
    %10 = vector.load %arg5[%c0_8, %c0_9] : memref<1x128xf32, #tpu.memory_space<vmem>>, vector<1x128xf32>
    %11 = arith.truncf %8 : vector<256x128xf32> to vector<256x128xbf16>
    %cst_10 = arith.constant dense<0.000000e+00> : vector<256x128xf32>
    %12 = tpu.matmul %11, %9, %cst_10 {dimension_numbers = #tpu.dot_dimension_numbers<[1], [0], [0], [1], [0, 0, 1, 1], [], []>} : vector<256x128xbf16>, vector<128x128xbf16>, vector<256x128xf32> -> vector<256x128xf32>
    %13 = vector.broadcast %10 : vector<1x128xf32> to vector<256x128xf32>
    %14 = arith.addf %12, %13 : vector<256x128xf32>
    %cst_11 = arith.constant 0.000000e+00 : f32
    %15 = vector.broadcast %cst_11 : f32 to vector<256x128xf32>
    %16 = arith.maximumf %14, %15 : vector<256x128xf32>
    %c0_12 = arith.constant 0 : index
    %c0_13 = arith.constant 0 : index
    %17 = vector.load %arg6[%c0_12, %c0_13] : memref<128x128xbf16, #tpu.memory_space<vmem>>, vector<128x128xbf16>
    %c0_14 = arith.constant 0 : index
    %c0_15 = arith.constant 0 : index
    %18 = vector.load %arg7[%c0_14, %c0_15] : memref<1x128xf32, #tpu.memory_space<vmem>>, vector<1x128xf32>
    %19 = arith.truncf %16 : vector<256x128xf32> to vector<256x128xbf16>
    %cst_16 = arith.constant dense<0.000000e+00> : vector<256x128xf32>
    %20 = tpu.matmul %19, %17, %cst_16 {dimension_numbers = #tpu.dot_dimension_numbers<[1], [0], [0], [1], [0, 0, 1, 1], [], []>} : vector<256x128xbf16>, vector<128x128xbf16>, vector<256x128xf32> -> vector<256x128xf32>
    %21 = vector.broadcast %18 : vector<1x128xf32> to vector<256x128xf32>
    %22 = arith.addf %20, %21 : vector<256x128xf32>
    %cst_17 = arith.constant 0.000000e+00 : f32
    %23 = vector.broadcast %cst_17 : f32 to vector<256x128xf32>
    %24 = arith.maximumf %22, %23 : vector<256x128xf32>
    %c0_18 = arith.constant 0 : index
    %c0_19 = arith.constant 0 : index
    %25 = vector.load %arg8[%c0_18, %c0_19] : memref<128x128xbf16, #tpu.memory_space<vmem>>, vector<128x128xbf16>
    %c0_20 = arith.constant 0 : index
    %c0_21 = arith.constant 0 : index
    %26 = vector.load %arg9[%c0_20, %c0_21] : memref<1x128xf32, #tpu.memory_space<vmem>>, vector<1x128xf32>
    %27 = arith.truncf %24 : vector<256x128xf32> to vector<256x128xbf16>
    %cst_22 = arith.constant dense<0.000000e+00> : vector<256x128xf32>
    %28 = tpu.matmul %27, %25, %cst_22 {dimension_numbers = #tpu.dot_dimension_numbers<[1], [0], [0], [1], [0, 0, 1, 1], [], []>} : vector<256x128xbf16>, vector<128x128xbf16>, vector<256x128xf32> -> vector<256x128xf32>
    %29 = vector.broadcast %26 : vector<1x128xf32> to vector<256x128xf32>
    %30 = arith.addf %28, %29 : vector<256x128xf32>
    %31 = arith.truncf %30 : vector<256x128xf32> to vector<256x128xbf16>
    %c0_23 = arith.constant 0 : index
    %c0_24 = arith.constant 0 : index
    %32 = vector.load %arg10[%c0_23, %c0_24] : memref<256x128xbf16, #tpu.memory_space<vmem>>, vector<256x128xbf16>
    tpu.vector_store %arg10[%c0_23, %c0_24], %31 {strides = array<i32>} : memref<256x128xbf16, #tpu.memory_space<vmem>>, vector<256x128xbf16>,
    return
  }
  func.func @transform_0(%arg0: i32) -> (i32, i32) {
    %c0_i32 = arith.constant 0 : i32
    %c0_i32_0 = arith.constant 0 : i32
    return %arg0, %c0_i32 : i32, i32
  }
  func.func @transform_1(%arg0: i32) -> (i32, i32) {
    %c0_i32 = arith.constant 0 : i32
    %c0_i32_0 = arith.constant 0 : i32
    %c0_i32_1 = arith.constant 0 : i32
    return %c0_i32, %c0_i32_0 : i32, i32
  }
  func.func @transform_2(%arg0: i32) -> (i32, i32) {
    %c0_i32 = arith.constant 0 : i32
    %c0_i32_0 = arith.constant 0 : i32
    %c0_i32_1 = arith.constant 0 : i32
    return %c0_i32, %c0_i32_0 : i32, i32
  }
  func.func @transform_3(%arg0: i32) -> (i32, i32) {
    %c0_i32 = arith.constant 0 : i32
    %c0_i32_0 = arith.constant 0 : i32
    %c0_i32_1 = arith.constant 0 : i32
    return %c0_i32, %c0_i32_0 : i32, i32
  }
  func.func @transform_4(%arg0: i32) -> (i32, i32) {
    %c0_i32 = arith.constant 0 : i32
    %c0_i32_0 = arith.constant 0 : i32
    %c0_i32_1 = arith.constant 0 : i32
    return %c0_i32, %c0_i32_0 : i32, i32
  }
  func.func @transform_5(%arg0: i32) -> (i32, i32) {
    %c0_i32 = arith.constant 0 : i32
    %c0_i32_0 = arith.constant 0 : i32
    %c0_i32_1 = arith.constant 0 : i32
    return %c0_i32, %c0_i32_0 : i32, i32
  }
  func.func @transform_6(%arg0: i32) -> (i32, i32) {
    %c0_i32 = arith.constant 0 : i32
    %c0_i32_0 = arith.constant 0 : i32
    %c0_i32_1 = arith.constant 0 : i32
    return %c0_i32, %c0_i32_0 : i32, i32
  }
  func.func @transform_7(%arg0: i32) -> (i32, i32) {
    %c0_i32 = arith.constant 0 : i32
    %c0_i32_0 = arith.constant 0 : i32
    %c0_i32_1 = arith.constant 0 : i32
    return %c0_i32, %c0_i32_0 : i32, i32
  }
  func.func @transform_8(%arg0: i32) -> (i32, i32) {
    %c0_i32 = arith.constant 0 : i32
    %c0_i32_0 = arith.constant 0 : i32
    %c0_i32_1 = arith.constant 0 : i32
    return %c0_i32, %c0_i32_0 : i32, i32
  }
  func.func @transform_9(%arg0: i32) -> (i32, i32) {
    %c0_i32 = arith.constant 0 : i32
    %c0_i32_0 = arith.constant 0 : i32
    return %arg0, %c0_i32 : i32, i32
  }
}

</mosaic_0001>

<bundles_post_ra>
// kernel: tpu_custom_call.1
= control target key start
LH: loop header
LB: loop body
LE: loop exit
PB: predicated region body
PF: predicated region fallthrough
CT: control target
= control target key end

     0   :  { %14 = vsyncpa [#allocation3], 0  ;;  %s4396_s0 = inlined_call_operand.hbm [shape: f32[256,1024], index: 0, kind: input, shape index: {}]   ;;  %s4397_s1 = inlined_call_operand.hbm [shape: bf16[1024,128], index: 1, kind: input, shape index: {}]   ;;  %s4398_s2 = inlined_call_operand.vmem [shape: f32[1,128], index: 2, kind: input, shape index: {}]   ;;  %s4399_s3 = inlined_call_operand.hbm [shape: bf16[128,128], index: 3, kind: input, shape index: {}]   ;;  %s4400_s4 = inlined_call_operand.vmem [shape: f32[1,128], index: 4, kind: input, shape index: {}]   ;;  %s4401_s5 = inlined_call_operand.hbm [shape: bf16[128,128], index: 5, kind: input, shape index: {}]   ;;  %s4402_s6 = inlined_call_operand.vmem [shape: f32[1,128], index: 6, kind: input, shape index: {}]   ;;  %s4403_s7 = inlined_call_operand.hbm [shape: bf16[128,128], index: 7, kind: input, shape index: {}]   ;;  %s4404_s8 = inlined_call_operand.vmem [shape: f32[1,128], index: 8, kind: input, shape index: {}]   ;;  %s4405_s9 = inlined_call_operand.hbm [shape: bf16[256,128], index: 9, kind: output, shape index: {}]  }
   0x1   :  { %15 = vsyncpa [#allocation6], 0 }
   0x2   :  { %16 = vsyncpa [#allocation9], 0 }
   0x3   :  { %17 = vsyncpa [#allocation4], 0  ;;  %s3836_s30 = smov [#allocation5]   ;;  %s3696_s13 = scalar_lea.hbm %s4397_s1, 8192 }
   0x4   :  { %s35_s10 = sshll.u32 %s3836_s30, 4  ;;  %p3697_p0 = scmp.ne.s32.totalorder %s4397_s1, %s3696_s13  ;;  %s36_s10 = int_to_ptr.vmem [resolvable:$true] %s35_s10 }
   0x5   :  { %p3700_p1 = scmp.lt.u32.totalorder %s3696_s13, %s4397_s1 }
   0x7   :  { %p3702_p2 = pnand %p3700_p1, %p3697_p0 }
   0x9   :  { %3705 = shalt.err (!%p3702_p2)
}
   0xa   :  { %s3706_s18 = scalar_lea.vmem %s36_s10, 8192  ;;  %p3711_p4 = scmp.lt.s32.totalorder %s36_s10, %s36_s10 }
   0xb   :  { %p3707_p3 = scmp.ne.s32.totalorder %s36_s10, %s3706_s18  ;;  %p3712_p5 = scmp.lt.s32.totalorder %s3706_s18, %s3706_s18 }
   0xd   :  { %p3713_p6 = por %p3712_p5, %p3711_p4 }
   0xf   :  { %p3714_p7 = pnand %p3713_p6, %p3707_p3 }
  0x11   :  { %3717 = shalt.err (!%p3714_p7)
}
  0x12   :  { %s3837_s19 = smov 64   ;;  %s3838_s20 = smov 4  }
  0x13   :  { %41 = dma.hbm_to_vmem [thread:$0]  %s4397_s1, 8192, %s36_s10, [#allocation6], %s3837_s19, %s3837_s19, %s3838_s20  }
  0x14   :  { %s3839_s23 = smov [#allocation8]   ;;  %s3840_s25 = smov [#allocation2]  }
  0x15   :  { %s63_s24 = sshll.u32 %s3839_s23, 4  ;;  %s23_s26 = sshll.u32 %s3840_s25, 4  ;;  %s64_s24 = int_to_ptr.vmem [resolvable:$true] %s63_s24  ;;  %s24_s26 = int_to_ptr.vmem [resolvable:$true] %s23_s26 }
  0x16   :  { %s3718_s29 = scalar_lea.hbm %s4401_s5, 1024 }
  0x17   :  { %p3719_p8 = scmp.ne.s32.totalorder %s4401_s5, %s3718_s29  ;;  %p3722_p9 = scmp.lt.u32.totalorder %s3718_s29, %s4401_s5 }
  0x19   :  { %p3724_p10 = pnand %p3722_p9, %p3719_p8 }
  0x1b   :  { %3727 = shalt.err (!%p3724_p10)
}
  0x1c   :  { %s3728_s1 = scalar_lea.vmem %s64_s24, 1024  ;;  %p3733_p12 = scmp.lt.s32.totalorder %s64_s24, %s64_s24 }
  0x1d   :  { %p3729_p11 = scmp.ne.s32.totalorder %s64_s24, %s3728_s1  ;;  %p3734_p13 = scmp.lt.s32.totalorder %s3728_s1, %s3728_s1 }
  0x1f   :  { %p3735_p0 = por %p3734_p13, %p3733_p12 }
  0x21   :  { %p3736_p1 = pnand %p3735_p0, %p3729_p11 }
  0x23   :  { %3739 = shalt.err (!%p3736_p1)
}
  0x24   :  { %69 = dma.hbm_to_vmem [thread:$0]  %s4401_s5, 1024, %s64_s24, [#allocation9], %s3837_s19, %s3837_s19, %s3838_s20  }
  0x25   :  { %s3740_s17 = scalar_lea.hbm %s4396_s0, 32768 }
  0x26   :  { %p3741_p2 = scmp.ne.s32.totalorder %s4396_s0, %s3740_s17  ;;  %p3744_p3 = scmp.lt.u32.totalorder %s3740_s17, %s4396_s0 }
  0x28   :  { %p3746_p4 = pnand %p3744_p3, %p3741_p2 }
  0x2a   :  { %3749 = shalt.err (!%p3746_p4)
}
  0x2b   :  { %s3750_s25 = scalar_lea.vmem %s24_s26, 32768  ;;  %p3755_p6 = scmp.lt.s32.totalorder %s24_s26, %s24_s26 }
  0x2c   :  { %p3751_p5 = scmp.ne.s32.totalorder %s24_s26, %s3750_s25  ;;  %p3756_p7 = scmp.lt.s32.totalorder %s3750_s25, %s3750_s25 }
  0x2e   :  { %p3757_p8 = por %p3756_p7, %p3755_p6 }
  0x30   :  { %p3758_p9 = pnand %p3757_p8, %p3751_p5 }
  0x32   :  { %3761 = shalt.err (!%p3758_p9)
}
  0x33   :  { %s3841_s5 = smov 1024   ;;  %s3842_s28 = smov [#allocation7]  }
  0x34   :  { %29 = dma.hbm_to_vmem [thread:$0]  %s4396_s0, 32768, %s24_s26, [#allocation3], %s3841_s5, %s3841_s5, %s3837_s19  }
  0x35   :  { %s49_s29 = sshll.u32 %s3842_s28, 4  ;;  %s3843_s30 = smov [#allocation10]   ;;  %s50_s29 = int_to_ptr.vmem [resolvable:$true] %s49_s29 }
  0x36   :  { %s77_s11 = sshll.u32 %s3843_s30, 4  ;;  %s3762_s1 = scalar_lea.hbm %s4399_s3, 1024  ;;  %s3938_s11 = int_to_ptr.vmem [resolvable:$true] %s77_s11 }
  0x37   :  { %p3763_p10 = scmp.ne.s32.totalorder %s4399_s3, %s3762_s1  ;;  %p3766_p11 = scmp.lt.u32.totalorder %s3762_s1, %s4399_s3 }
  0x39   :  { %p3768_p12 = pnand %p3766_p11, %p3763_p10 }
  0x3b   :  { %3771 = shalt.err (!%p3768_p12)
}
  0x3c   :  { %s3772_s0 = scalar_lea.vmem %s50_s29, 1024  ;;  %p3777_p0 = scmp.lt.s32.totalorder %s50_s29, %s50_s29 }
  0x3d   :  { %p3773_p13 = scmp.ne.s32.totalorder %s50_s29, %s3772_s0  ;;  %p3778_p1 = scmp.lt.s32.totalorder %s3772_s0, %s3772_s0 }
  0x3f   :  { %p3779_p2 = por %p3778_p1, %p3777_p0 }
  0x41   :  { %p3780_p3 = pnand %p3779_p2, %p3773_p13 }
  0x43   :  { %3783 = shalt.err (!%p3780_p3)
}
  0x44   :  { %55 = dma.hbm_to_vmem [thread:$0]  %s4399_s3, 1024, %s50_s29, [#allocation6], %s3837_s19, %s3837_s19, %s3838_s20  }
  0x45   :  { %s3784_s22 = scalar_lea.hbm %s4403_s7, 1024 }
  0x46   :  { %p3785_p4 = scmp.ne.s32.totalorder %s4403_s7, %s3784_s22  ;;  %p3788_p5 = scmp.lt.u32.totalorder %s3784_s22, %s4403_s7 }
  0x48   :  { %p3790_p6 = pnand %p3788_p5, %p3785_p4 }
  0x4a   :  { %3793 = shalt.err (!%p3790_p6)
}
  0x4b   :  { %s3794_s27 = scalar_lea.vmem %s3938_s11, 1024  ;;  %p3799_p8 = scmp.lt.s32.totalorder %s3938_s11, %s3938_s11 }
  0x4c   :  { %p3795_p7 = scmp.ne.s32.totalorder %s3938_s11, %s3794_s27  ;;  %p3800_p9 = scmp.lt.s32.totalorder %s3794_s27, %s3794_s27 }
  0x4e   :  { %p3801_p10 = por %p3800_p9, %p3799_p8 }
  0x50   :  { %p3802_p11 = pnand %p3801_p10, %p3795_p7 }
  0x52   :  { %3805 = shalt.err (!%p3802_p11)
}
  0x53   :  { %83 = dma.hbm_to_vmem [thread:$0]  %s4403_s7, 1024, %s3938_s11, [#allocation9], %s3837_s19, %s3837_s19, %s3838_s20  }
  0x54   :  { %3828 = dma.done.wait [#allocation3], 32768  }
  0x55   :  { %3829 = vsyncadd [#allocation3], 4294934528 }
  0x56   :  { %3830 = dma.done.wait [#allocation6], 9216  }
  0x57   :  { %3831 = vsyncadd [#allocation6], 4294958080 }
  0x58   :  { %3832 = dma.done.wait [#allocation9], 2048  }
  0x59   :  { %3833 = vsyncadd [#allocation9], 4294965248  ;;  %v3608_v0 = vld [vmem:[#allocation5 + $0x40] sm:$0xff]   ;;  %v3610_v2 = vld [vmem:[#allocation5 + $0x48] sm:$0xff]  }
  0x5a   :  { %v3609_v1 = vld [vmem:[#allocation5] sm:$0xff]   ;;  %2919 = vmatprep.subr.bf16.mxu0 %v3608_v0  ;;  %3583 = vmatprep.subr.bf16.mxu1 %v3608_v0  ;;  %v3611_v3 = vld [vmem:[#allocation5 + $0x8] sm:$0xff]   ;;  %v3612_v4 = vld [vmem:[#allocation5 + $0x50] sm:$0xff]  }
  0x5b   :  { %2920 = vmatpush3.bf16.msra.mxu0 %v3609_v1  ;;  %3591 = vmatpush3.bf16.msra.mxu1 %v3609_v1  ;;  %v3613_v5 = vld [vmem:[#allocation5 + $0x10] sm:$0xff]   ;;  %v3614_v6 = vld [vmem:[#allocation5 + $0x58] sm:$0xff]   ;;  %v3616_v8 = vld [vmem:[#allocation5 + $0x60] sm:$0xff]  }
  0x5c   :  { %2921 = vmatprep.subr.bf16.mxu0 %v3610_v2  ;;  %3584 = vmatprep.subr.bf16.mxu1 %v3610_v2  ;;  %v3615_v7 = vld [vmem:[#allocation5 + $0x18] sm:$0xff]   ;;  %v3617_v9 = vld [vmem:[#allocation5 + $0x20] sm:$0xff]   ;;  %v3618_v10 = vld [vmem:[#allocation5 + $0x68] sm:$0xff]  }
  0x5d   :  { %v103_v11 = vld [vmem:[#allocation2 + $0x8] sm:$0xff]  ;;  %v3620_v18 = vld [vmem:[#allocation5 + $0x70] sm:$0xff]   ;;  %v3622_v20 = vld [vmem:[#allocation5 + $0x78] sm:$0xff]  }
  0x5e   :  { %v111_v12 = vld [vmem:[#allocation2 + $0x48] sm:$0xff]  ;;  %v3621_v19 = vld [vmem:[#allocation5 + $0x30] sm:$0xff]   ;;  %v3623_v21 = vld [vmem:[#allocation5 + $0x38] sm:$0xff]  }
  0x5f   :  { %2922 = vmatpush3.bf16.msra.mxu0 %v3611_v3  ;;  %3592 = vmatpush3.bf16.msra.mxu1 %v3611_v3  ;;  %v295_v13 = vld [vmem:[#allocation2 + $0x608] sm:$0xff]  ;;  %v488_v14 = vpack.c.bf16 %v111_v12, %v103_v11  ;;  %v102_v22 = vld [vmem:[#allocation2] sm:$0xff]  ;;  %v3628_v42 = vld [vmem:[#allocation5 + $0xd0] sm:$0xff]  }
  0x60   :  { %2923 = vmatprep.subr.bf16.mxu0 %v3612_v4  ;;  %3585 = vmatprep.subr.bf16.mxu1 %v3612_v4  ;;  %v303_v15 = vld [vmem:[#allocation2 + $0x648] sm:$0xff]  ;;  %v110_v23 = vld [vmem:[#allocation2 + $0x40] sm:$0xff]  ;;  %v3629_v49 = vld [vmem:[#allocation5 + $0x90] sm:$0xff]  }
  0x61   :  { %v584_v16 = vpack.c.bf16 %v303_v15, %v295_v13  ;;  %v3619_v17 = vld [vmem:[#allocation5 + $0x28] sm:$0xff]   ;;  %1037 = vmatprep.mubr.bf16.mxu0 %v488_v14  ;;  %v294_v24 = vld [vmem:[#allocation2 + $0x600] sm:$0xff]  ;;  %v487_v31 = vpack.c.bf16 %v110_v23, %v102_v22  ;;  %v3630_v51 = vld [vmem:[#allocation5 + $0xd8] sm:$0xff]  }
  0x62   :  { %v302_v25 = vld [vmem:[#allocation2 + $0x640] sm:$0xff]  ;;  %v119_v27 = vld [vmem:[#allocation2 + $0x88] sm:$0xff]  ;;  %v3631_v53 = vld [vmem:[#allocation5 + $0x98] sm:$0xff]  }
  0x63   :  { %2924 = vmatpush3.bf16.msra.mxu0 %v3613_v5  ;;  %3593 = vmatpush3.bf16.msra.mxu1 %v3613_v5  ;;  %v3624_v26 = vld [vmem:[#allocation5 + $0xc0] sm:$0xff]   ;;  %v127_v28 = vld [vmem:[#allocation2 + $0xc8] sm:$0xff]  ;;  %v583_v32 = vpack.c.bf16 %v302_v25, %v294_v24  ;;  %v105_v13 = vld [vmem:[#allocation2 + $0x18] sm:$0xff] }
  0x64   :  { %2925 = vmatprep.subr.bf16.mxu0 %v3614_v6  ;;  %3586 = vmatprep.subr.bf16.mxu1 %v3614_v6  ;;  %v311_v29 = vld [vmem:[#allocation2 + $0x688] sm:$0xff]  ;;  %v3625_v33 = vld [vmem:[#allocation5 + $0x80] sm:$0xff]   ;;  %v496_v34 = vpack.c.bf16 %v127_v28, %v119_v27  ;;  %v113_v14 = vld [vmem:[#allocation2 + $0x58] sm:$0xff] }
  0x65   :  { %1133 = vmatprep.mubr.bf16.mxu1 %v584_v16  ;;  %v319_v30 = vld [vmem:[#allocation2 + $0x6c8] sm:$0xff]  ;;  %v118_v38 = vld [vmem:[#allocation2 + $0x80] sm:$0xff]  ;;  %v104_v24 = vld [vmem:[#allocation2 + $0x10] sm:$0xff] }
  0x66   :  { %v3626_v35 = vld [vmem:[#allocation5 + $0xc8] sm:$0xff]   ;;  %v592_v36 = vpack.c.bf16 %v319_v30, %v311_v29  ;;  %v126_v39 = vld [vmem:[#allocation2 + $0xc0] sm:$0xff]  ;;  %v112_v25 = vld [vmem:[#allocation2 + $0x50] sm:$0xff] }
  0x67   :  { %2926 = vmatpush3.bf16.msra.mxu0 %v3615_v7  ;;  %3594 = vmatpush3.bf16.msra.mxu1 %v3615_v7  ;;  %v3627_v37 = vld [vmem:[#allocation5 + $0x88] sm:$0xff]   ;;  %v310_v40 = vld [vmem:[#allocation2 + $0x680] sm:$0xff]  ;;  %v495_v47 = vpack.c.bf16 %v126_v39, %v118_v38 }
  0x68   :  { %2927 = vmatprep.subr.bf16.mxu0 %v3616_v8  ;;  %3587 = vmatprep.subr.bf16.mxu1 %v3616_v8  ;;  %v318_v41 = vld [vmem:[#allocation2 + $0x6c0] sm:$0xff]  ;;  %v135_v43 = vld [vmem:[#allocation2 + $0x108] sm:$0xff] }
  0x69   :  { %v143_v44 = vld [vmem:[#allocation2 + $0x148] sm:$0xff]  ;;  %v591_v48 = vpack.c.bf16 %v318_v41, %v310_v40  ;;  %v134_v54 = vld [vmem:[#allocation2 + $0x100] sm:$0xff]  ;;  %v120_v41 = vld [vmem:[#allocation2 + $0x90] sm:$0xff] }
  0x6a   :  { %v327_v45 = vld [vmem:[#allocation2 + $0x708] sm:$0xff]  ;;  %v504_v50 = vpack.c.bf16 %v143_v44, %v135_v43  ;;  %v142_v55 = vld [vmem:[#allocation2 + $0x140] sm:$0xff]  ;;  %v128_v43 = vld [vmem:[#allocation2 + $0xd0] sm:$0xff] }
  0x6b   :  { %2928 = vmatpush3.bf16.msra.mxu0 %v3617_v9  ;;  %3595 = vmatpush3.bf16.msra.mxu1 %v3617_v9  ;;  %v335_v46 = vld [vmem:[#allocation2 + $0x748] sm:$0xff]  ;;  %v326_v56 = vld [vmem:[#allocation2 + $0x700] sm:$0xff]  ;;  %v503_v63 = vpack.c.bf16 %v142_v55, %v134_v54 }
  0x6c   :  { %2929 = vmatprep.subr.bf16.mxu0 %v3618_v10  ;;  %3588 = vmatprep.subr.bf16.mxu1 %v3618_v10  ;;  %v600_v52 = vpack.c.bf16 %v335_v46, %v327_v45  ;;  %v334_v57 = vld [vmem:[#allocation2 + $0x740] sm:$0xff]  ;;  %v151_v59 = vld [vmem:[#allocation2 + $0x188] sm:$0xff]  ;;  %v3636_v10 = vld [vmem:[#allocation5 + $0xf0] sm:$0xff]  }
  0x6d   :  { %v3632_v58 = vld [vmem:[#allocation5 + $0xe0] sm:$0xff]   ;;  %v159_v60 = vld [vmem:[#allocation2 + $0x1c8] sm:$0xff]  ;;  %v599_v0 = vpack.c.bf16 %v334_v57, %v326_v56  ;;  %v3647_v56 = vld [vmem:[#allocation5 + $0x190] sm:$0xff]  }
  0x6e   :  { %v343_v61 = vld [vmem:[#allocation2 + $0x788] sm:$0xff]  ;;  %v3633_v1 = vld [vmem:[#allocation5 + $0xa0] sm:$0xff]   ;;  %v512_v2 = vpack.c.bf16 %v159_v60, %v151_v59  ;;  %v3651_v57 = vld [vmem:[#allocation5 + $0x110] sm:$0xff]  }
  0x6f   :  { %2930 = vmatpush3.bf16.msra.mxu0 %v3619_v17  ;;  %3596 = vmatpush3.bf16.msra.mxu1 %v3619_v17  ;;  %v351_v62 = vld [vmem:[#allocation2 + $0x7c8] sm:$0xff]  ;;  %v150_v6 = vld [vmem:[#allocation2 + $0x180] sm:$0xff]  ;;  %v3637_v17 = vld [vmem:[#allocation5 + $0xb0] sm:$0xff]  }
  0x70   :  { %2931 = vmatprep.subr.bf16.mxu0 %v3620_v18  ;;  %3589 = vmatprep.subr.bf16.mxu1 %v3620_v18  ;;  %v3634_v3 = vld [vmem:[#allocation5 + $0xe8] sm:$0xff]   ;;  %v608_v4 = vpack.c.bf16 %v351_v62, %v343_v61  ;;  %v158_v7 = vld [vmem:[#allocation2 + $0x1c0] sm:$0xff]  ;;  %v136_v60 = vld [vmem:[#allocation2 + $0x110] sm:$0xff] }
  0x71   :  { %v3635_v5 = vld [vmem:[#allocation5 + $0xa8] sm:$0xff]   ;;  %v342_v8 = vld [vmem:[#allocation2 + $0x780] sm:$0xff]  ;;  %v511_v15 = vpack.c.bf16 %v158_v7, %v150_v6  ;;  %v144_v61 = vld [vmem:[#allocation2 + $0x150] sm:$0xff] }
  0x72   :  { %v350_v9 = vld [vmem:[#allocation2 + $0x7c0] sm:$0xff]  ;;  %v167_v11 = vld [vmem:[#allocation2 + $0x208] sm:$0xff]  ;;  %v3652_v62 = vld [vmem:[#allocation5 + $0x158] sm:$0xff]   ;;  %v505_v7 = vpack.c.bf16 %v144_v61, %v136_v60 }
  0x73   :  { %2932 = vmatpush3.bf16.msra.mxu0 %v3621_v19  ;;  %3597 = vmatpush3.bf16.msra.mxu1 %v3621_v19  ;;  %v175_v12 = vld [vmem:[#allocation2 + $0x248] sm:$0xff]  ;;  %v607_v16 = vpack.c.bf16 %v350_v9, %v342_v8  ;;  %v3638_v19 = vld [vmem:[#allocation5 + $0xf8] sm:$0xff]   ;;  %v166_v22 = vld [vmem:[#allocation2 + $0x200] sm:$0xff] }
  0x74   :  { %2933 = vmatprep.subr.bf16.mxu0 %v3622_v20  ;;  %3590 = vmatprep.subr.bf16.mxu1 %v3622_v20  ;;  %v520_v18 = vpack.c.bf16 %v175_v12, %v167_v11  ;;  %v490_v20 = vpack.c.bf16 %v113_v14, %v105_v13  ;;  %v174_v23 = vld [vmem:[#allocation2 + $0x240] sm:$0xff]  ;;  %v183_v28 = vld [vmem:[#allocation2 + $0x288] sm:$0xff]  ;;  %v200_v60 = vld [vmem:[#allocation2 + $0x310] sm:$0xff] }
  0x75   :  { %v3640_v27 = vld [vmem:[#allocation5 + $0x1c0] sm:$0xff]   ;;  %v191_v29 = vld [vmem:[#allocation2 + $0x2c8] sm:$0xff]  ;;  %v3668_v61 = vld [vmem:[#allocation5 + $0x1f0] sm:$0xff]  }
  0x76   :  { %v3645_v30 = vld [vmem:[#allocation5 + $0x100] sm:$0xff]   ;;  %v3642_v38 = vld [vmem:[#allocation5 + $0x1c8] sm:$0xff]  }
  0x77   :  { %2934 = vmatpush3.bf16.msra.mxu0 %v3623_v21  ;;  %3598 = vmatpush3.bf16.msra.mxu1 %v3623_v21  ;;  %v3639_v21 = vld [vmem:[#allocation5 + $0xb8] sm:$0xff]   ;;  %v182_v39 = vld [vmem:[#allocation2 + $0x280] sm:$0xff]  ;;  %v199_v44 = vld [vmem:[#allocation2 + $0x308] sm:$0xff] }
  0x78   :  { %3031 = vmatprep.subr.bf16.mxu1 %v3624_v26  ;;  %v3644_v26 = vld [vmem:[#allocation5 + $0x140] sm:$0xff]   ;;  %v3649_v45 = vld [vmem:[#allocation5 + $0x108] sm:$0xff]  }
  0x79   :  { %3143 = vmatprep.subr.bf16.mxu0 %v3644_v26  ;;  %v190_v40 = vld [vmem:[#allocation2 + $0x2c0] sm:$0xff]  ;;  %v207_v46 = vld [vmem:[#allocation2 + $0x348] sm:$0xff] }
  0x7a   :  { %1038 = vmatmul.mubr.bf16.vlgmr.msra.gmra.mrb[0].mxu0 %v487_v31  ;;  %1134 = vmatmul.mubr.bf16.vlgmr.msra.gmra.mrb[0].mxu1 %v583_v32  ;;  %v121_v31 = vld [vmem:[#allocation2 + $0x98] sm:$0xff]  ;;  %v536_v54 = vpack.c.bf16 %v207_v46, %v199_v44  ;;  %v206_v59 = vld [vmem:[#allocation2 + $0x340] sm:$0xff]  ;;  %v3658_v14 = vld [vmem:[#allocation5 + $0x168] sm:$0xff]  }
  0x7b   :  { %3032 = vmatpush3.bf16.msra.mxu1 %v3625_v33  ;;  %1045 = vmatprep.mubr.bf16.mxu0 %v496_v34  ;;  %v129_v32 = vld [vmem:[#allocation2 + $0xd8] sm:$0xff]  ;;  %v519_v33 = vpack.c.bf16 %v174_v23, %v166_v22  ;;  %v489_v34 = vpack.c.bf16 %v112_v25, %v104_v24  ;;  %v3656_v11 = vld [vmem:[#allocation5 + $0x120] sm:$0xff]   ;;  %v3660_v22 = vld [vmem:[#allocation5 + $0x170] sm:$0xff]  }
  0x7c   :  { %3033 = vmatprep.subr.bf16.mxu1 %v3626_v35  ;;  %1141 = vmatprep.mubr.bf16.mxu1 %v592_v36  ;;  %v3641_v35 = vld [vmem:[#allocation5 + $0x180] sm:$0xff]   ;;  %v528_v36 = vpack.c.bf16 %v191_v29, %v183_v28  ;;  %v184_v46 = vld [vmem:[#allocation2 + $0x290] sm:$0xff] }
  0x7d   :  { %3144 = vmatpush3.bf16.msra.mxu0 %v3645_v30  ;;  %v214_v12 = vld [vmem:[#allocation2 + $0x380] sm:$0xff]  ;;  %v168_v30 = vld [vmem:[#allocation2 + $0x210] sm:$0xff] }
  0x7e   :  { %v222_v13 = vld [vmem:[#allocation2 + $0x3c0] sm:$0xff] }
  0x7f   :  { %3034 = vmatpush3.bf16.msra.mxu1 %v3627_v37  ;;  %v498_v37 = vpack.c.bf16 %v129_v32, %v121_v31  ;;  %v543_v23 = vpack.c.bf16 %v222_v13, %v214_v12  ;;  %v230_v28 = vld [vmem:[#allocation2 + $0x400] sm:$0xff]  ;;  %v176_v31 = vld [vmem:[#allocation2 + $0x250] sm:$0xff]  ;;  %v3662_v32 = vld [vmem:[#allocation5 + $0x178] sm:$0xff]  }
  0x80   :  { %3035 = vmatprep.subr.bf16.mxu1 %v3628_v42  ;;  %v3648_v42 = vld [vmem:[#allocation5 + $0x148] sm:$0xff]   ;;  %v238_v29 = vld [vmem:[#allocation2 + $0x440] sm:$0xff]  ;;  %v216_v12 = vld [vmem:[#allocation2 + $0x390] sm:$0xff] }
  0x81   :  { %3145 = vmatprep.subr.bf16.mxu0 %v3648_v42  ;;  %v246_v44 = vld [vmem:[#allocation2 + $0x480] sm:$0xff]  ;;  %v224_v13 = vld [vmem:[#allocation2 + $0x3d0] sm:$0xff] }
  0x82   :  { %1046 = vmatmul.mubr.bf16.gmra.mrb[4].mxu0 %v495_v47  ;;  %1142 = vmatmul.mubr.bf16.gmra.mrb[4].mxu1 %v591_v48  ;;  %v137_v47 = vld [vmem:[#allocation2 + $0x118] sm:$0xff]  ;;  %v3643_v48 = vld [vmem:[#allocation5 + $0x188] sm:$0xff]  }
  0x83   :  { %3036 = vmatpush3.bf16.msra.mxu1 %v3629_v49  ;;  %1053 = vmatprep.mubr.bf16.mxu0 %v504_v50  ;;  %v145_v49 = vld [vmem:[#allocation2 + $0x158] sm:$0xff]  ;;  %v3646_v50 = vld [vmem:[#allocation5 + $0x1d0] sm:$0xff]  }
  0x84   :  { %3037 = vmatprep.subr.bf16.mxu1 %v3630_v51  ;;  %1149 = vmatprep.mubr.bf16.mxu1 %v600_v52  ;;  %v3650_v51 = vld [vmem:[#allocation5 + $0x150] sm:$0xff]   ;;  %v527_v52 = vpack.c.bf16 %v190_v40, %v182_v39  ;;  %v506_v55 = vpack.c.bf16 %v145_v49, %v137_v47  ;;  %v3665_v39 = vld [vmem:[#allocation5 + $0x1a0] sm:$0xff]   ;;  %v551_v40 = vpack.c.bf16 %v238_v29, %v230_v28  ;;  %v3666_v49 = vld [vmem:[#allocation5 + $0x1e8] sm:$0xff]  }
  0x85   :  { %3146 = vmatpush3.bf16.msra.mxu0 %v3649_v45  ;;  %v254_v45 = vld [vmem:[#allocation2 + $0x4c0] sm:$0xff]  ;;  %v192_v47 = vld [vmem:[#allocation2 + $0x2d0] sm:$0xff]  ;;  %v123_v28 = vld [vmem:[#allocation2 + $0xa8] sm:$0xff] }
  0x86   :  { %3147 = vmatprep.subr.bf16.mxu0 %v3650_v51  ;;  %v271_v51 = vld [vmem:[#allocation2 + $0x548] sm:$0xff] }
  0x87   :  { %3038 = vmatpush3.bf16.msra.mxu1 %v3631_v53  ;;  %v497_v53 = vpack.c.bf16 %v128_v43, %v120_v41  ;;  %v521_v41 = vpack.c.bf16 %v176_v31, %v168_v30  ;;  %v131_v29 = vld [vmem:[#allocation2 + $0xe8] sm:$0xff] }
  0x88   :  { %3039 = vmatprep.subr.bf16.mxu1 %v3632_v58  ;;  %v198_v58 = vld [vmem:[#allocation2 + $0x300] sm:$0xff] }
  0x89   :  { %3148 = vmatpush3.bf16.msra.mxu0 %v3651_v57  ;;  %v535_v6 = vpack.c.bf16 %v206_v59, %v198_v58  ;;  %v262_v58 = vld [vmem:[#allocation2 + $0x500] sm:$0xff] }
  0x8a   :  { %1054 = vmatmul.mubr.bf16.gmra.mrb[8].mxu0 %v503_v63  ;;  %1150 = vmatmul.mubr.bf16.gmra.mrb[8].mxu1 %v599_v0  ;;  %v215_v63 = vld [vmem:[#allocation2 + $0x388] sm:$0xff]  ;;  %v270_v59 = vld [vmem:[#allocation2 + $0x540] sm:$0xff] }
  0x8b   :  { %3040 = vmatpush3.bf16.msra.mxu1 %v3633_v1  ;;  %1061 = vmatprep.mubr.bf16.mxu0 %v512_v2  ;;  %v223_v0 = vld [vmem:[#allocation2 + $0x3c8] sm:$0xff]  ;;  %v153_v1 = vld [vmem:[#allocation2 + $0x198] sm:$0xff] }
  0x8c   :  { %3041 = vmatprep.subr.bf16.mxu1 %v3634_v3  ;;  %1157 = vmatprep.mubr.bf16.mxu1 %v608_v4  ;;  %v161_v2 = vld [vmem:[#allocation2 + $0x1d8] sm:$0xff]  ;;  %v3654_v4 = vld [vmem:[#allocation5 + $0x160] sm:$0xff]   ;;  %v544_v8 = vpack.c.bf16 %v223_v0, %v215_v63  ;;  %v279_v63 = vld [vmem:[#allocation2 + $0x588] sm:$0xff] }
  0x8d   :  { %v3653_v3 = vld [vmem:[#allocation5 + $0x118] sm:$0xff]   ;;  %3149 = vmatprep.subr.bf16.mxu0 %v3652_v62  ;;  %v514_v9 = vpack.c.bf16 %v161_v2, %v153_v1  ;;  %v208_v62 = vld [vmem:[#allocation2 + $0x350] sm:$0xff]  ;;  %v287_v1 = vld [vmem:[#allocation2 + $0x5c8] sm:$0xff] }
  0x8e   :  { %3150 = vmatpush3.bf16.msra.mxu0 %v3653_v3  ;;  %v3669_v0 = vld [vmem:[#allocation5 + $0x1b0] sm:$0xff]   ;;  %v217_v2 = vld [vmem:[#allocation2 + $0x398] sm:$0xff] }
  0x8f   :  { %3042 = vmatpush3.bf16.msra.mxu1 %v3635_v5  ;;  %v3655_v5 = vld [vmem:[#allocation5 + $0x1d8] sm:$0xff]   ;;  %3151 = vmatprep.subr.bf16.mxu0 %v3654_v4  ;;  %v567_v4 = vpack.c.bf16 %v270_v59, %v262_v58  ;;  %v280_v58 = vld [vmem:[#allocation2 + $0x590] sm:$0xff] }
  0x90   :  { %3043 = vmatprep.subr.bf16.mxu1 %v3636_v10  ;;  %v3657_v10 = vld [vmem:[#allocation5 + $0x198] sm:$0xff]   ;;  %v288_v59 = vld [vmem:[#allocation2 + $0x5d0] sm:$0xff] }
  0x91   :  { %v225_v3 = vld [vmem:[#allocation2 + $0x3d8] sm:$0xff] }
  0x92   :  { %1062 = vmatmul.mubr.bf16.gmra.mrb[12].mxu0 %v511_v15  ;;  %1158 = vmatmul.mubr.bf16.gmra.mrb[12].mxu1 %v607_v16  ;;  %v152_v15 = vld [vmem:[#allocation2 + $0x190] sm:$0xff] }
  0x93   :  { %3044 = vmatpush3.bf16.msra.mxu1 %v3637_v17  ;;  %1069 = vmatprep.mubr.bf16.mxu0 %v520_v18  ;;  %v160_v16 = vld [vmem:[#allocation2 + $0x1d0] sm:$0xff]  ;;  %v231_v17 = vld [vmem:[#allocation2 + $0x408] sm:$0xff] }
  0x94   :  { %3045 = vmatprep.subr.bf16.mxu1 %v3638_v19  ;;  %1198 = vmatprep.mubr.bf16.mxu1 %v490_v20  ;;  %v239_v18 = vld [vmem:[#allocation2 + $0x448] sm:$0xff]  ;;  %v169_v19 = vld [vmem:[#allocation2 + $0x218] sm:$0xff]  ;;  %v513_v24 = vpack.c.bf16 %v160_v16, %v152_v15 }
  0x95   :  { %v177_v20 = vld [vmem:[#allocation2 + $0x258] sm:$0xff]  ;;  %3152 = vmatpush3.bf16.msra.mxu0 %v3656_v11  ;;  %v552_v25 = vpack.c.bf16 %v239_v18, %v231_v17  ;;  %v107_v16 = vld [vmem:[#allocation2 + $0x28] sm:$0xff] }
  0x96   :  { %3153 = vmatprep.subr.bf16.mxu0 %v3658_v14  ;;  %v522_v26 = vpack.c.bf16 %v177_v20, %v169_v19  ;;  %v3671_v11 = vld [vmem:[#allocation5 + $0x1b8] sm:$0xff]   ;;  %v115_v17 = vld [vmem:[#allocation2 + $0x68] sm:$0xff]  ;;  %v545_v19 = vpack.c.bf16 %v224_v13, %v216_v12 }
  0x97   :  { %3046 = vmatpush3.bf16.msra.mxu1 %v3639_v21  ;;  %v3659_v21 = vld [vmem:[#allocation5 + $0x128] sm:$0xff]   ;;  %v233_v14 = vld [vmem:[#allocation2 + $0x418] sm:$0xff] }
  0x98   :  { %3255 = vmatprep.subr.bf16.mxu1 %v3640_v27  ;;  %v3661_v27 = vld [vmem:[#allocation5 + $0x130] sm:$0xff]   ;;  %v241_v15 = vld [vmem:[#allocation2 + $0x458] sm:$0xff]  ;;  %v187_v12 = vld [vmem:[#allocation2 + $0x2a8] sm:$0xff] }
  0x99   :  { %3154 = vmatpush3.bf16.msra.mxu0 %v3659_v21  ;;  %v554_v20 = vpack.c.bf16 %v241_v15, %v233_v14  ;;  %v492_v21 = vpack.c.bf16 %v115_v17, %v107_v16  ;;  %v195_v13 = vld [vmem:[#allocation2 + $0x2e8] sm:$0xff] }
  0x9a   :  { %1070 = vmatmul.mubr.bf16.gmra.mrb[16].mxu0 %v519_v33  ;;  %1199 = vmatmul.mubr.bf16.vlgmr.msra.gmra.mrb[16].mxu1 %v489_v34  ;;  %v247_v33 = vld [vmem:[#allocation2 + $0x488] sm:$0xff]  ;;  %v532_v17 = vpack.c.bf16 %v195_v13, %v187_v12 }
  0x9b   :  { %3256 = vmatpush3.bf16.msra.mxu1 %v3641_v35  ;;  %1077 = vmatprep.mubr.bf16.mxu0 %v528_v36  ;;  %v255_v34 = vld [vmem:[#allocation2 + $0x4c8] sm:$0xff]  ;;  %v185_v35 = vld [vmem:[#allocation2 + $0x298] sm:$0xff] }
  0x9c   :  { %1206 = vmatprep.mubr.bf16.mxu1 %v498_v37  ;;  %3257 = vmatprep.subr.bf16.mxu1 %v3642_v38  ;;  %v193_v36 = vld [vmem:[#allocation2 + $0x2d8] sm:$0xff]  ;;  %v3664_v37 = vld [vmem:[#allocation5 + $0x1e0] sm:$0xff]   ;;  %v560_v42 = vpack.c.bf16 %v255_v34, %v247_v33  ;;  %v500_v33 = vpack.c.bf16 %v131_v29, %v123_v28  ;;  %v248_v34 = vld [vmem:[#allocation2 + $0x490] sm:$0xff] }
  0x9d   :  { %3155 = vmatprep.subr.bf16.mxu0 %v3660_v22  ;;  %v3663_v38 = vld [vmem:[#allocation5 + $0x138] sm:$0xff]   ;;  %v530_v43 = vpack.c.bf16 %v193_v36, %v185_v35  ;;  %v232_v22 = vld [vmem:[#allocation2 + $0x410] sm:$0xff]  ;;  %v122_v36 = vld [vmem:[#allocation2 + $0xa0] sm:$0xff] }
  0x9e   :  { %3156 = vmatpush3.bf16.msra.mxu0 %v3661_v27  ;;  %v257_v27 = vld [vmem:[#allocation2 + $0x4d8] sm:$0xff]  ;;  %v256_v35 = vld [vmem:[#allocation2 + $0x4d0] sm:$0xff] }
  0x9f   :  { %3258 = vmatpush3.bf16.msra.mxu1 %v3643_v48  ;;  %3157 = vmatprep.subr.bf16.mxu0 %v3662_v32  ;;  %v263_v48 = vld [vmem:[#allocation2 + $0x508] sm:$0xff] }
  0xa0   :  { %3259 = vmatprep.subr.bf16.mxu1 %v3646_v50  ;;  %v3667_v50 = vld [vmem:[#allocation5 + $0x1a8] sm:$0xff]  }
  0xa2   :  { %1078 = vmatmul.mubr.bf16.gmra.mrb[20].mxu0 %v527_v52  ;;  %1207 = vmatmul.mubr.bf16.gmra.mrb[20].mxu1 %v497_v53  ;;  %v201_v52 = vld [vmem:[#allocation2 + $0x318] sm:$0xff] }
  0xa3   :  { %1085 = vmatprep.mubr.bf16.mxu0 %v536_v54  ;;  %1214 = vmatprep.mubr.bf16.mxu1 %v506_v55  ;;  %v209_v53 = vld [vmem:[#allocation2 + $0x358] sm:$0xff]  ;;  %v559_v54 = vpack.c.bf16 %v254_v45, %v246_v44  ;;  %v529_v55 = vpack.c.bf16 %v192_v47, %v184_v46  ;;  %v264_v46 = vld [vmem:[#allocation2 + $0x510] sm:$0xff] }
  0xa4   :  { %3260 = vmatpush3.bf16.msra.mxu1 %v3647_v56  ;;  %3158 = vmatpush3.bf16.msra.mxu0 %v3663_v38  ;;  %v568_v56 = vpack.c.bf16 %v271_v51, %v263_v48  ;;  %v538_v57 = vpack.c.bf16 %v209_v53, %v201_v52  ;;  %v265_v38 = vld [vmem:[#allocation2 + $0x518] sm:$0xff]  ;;  %v272_v47 = vld [vmem:[#allocation2 + $0x550] sm:$0xff]  ;;  %v138_v48 = vld [vmem:[#allocation2 + $0x120] sm:$0xff] }
  0xa5   :  { %3261 = vmatprep.subr.bf16.mxu1 %v3655_v5  ;;  %v537_v5 = vpack.c.bf16 %v208_v62, %v200_v60  ;;  %v289_v51 = vld [vmem:[#allocation2 + $0x5d8] sm:$0xff]  ;;  %v155_v52 = vld [vmem:[#allocation2 + $0x1a8] sm:$0xff]  ;;  %v154_v60 = vld [vmem:[#allocation2 + $0x1a0] sm:$0xff] }
  0xa6   :  { %v163_v53 = vld [vmem:[#allocation2 + $0x1e8] sm:$0xff]  ;;  %v297_v62 = vld [vmem:[#allocation2 + $0x618] sm:$0xff] }
  0xa8   :  { %3262 = vmatpush3.bf16.msra.mxu1 %v3657_v10  ;;  %v286_v10 = vld [vmem:[#allocation2 + $0x5c0] sm:$0xff] }
  0xa9   :  { %3263 = vmatprep.subr.bf16.mxu1 %v3664_v37  ;;  %v130_v37 = vld [vmem:[#allocation2 + $0xe0] sm:$0xff] }
  0xaa   :  { %1086 = vmatmul.mubr.bf16.gmra.mrb[24].mxu0 %v535_v6  ;;  %1215 = vmatmul.mubr.bf16.gmra.mrb[24].mxu1 %v505_v7  ;;  %v576_v6 = vpack.c.bf16 %v287_v1, %v279_v63  ;;  %v546_v7 = vpack.c.bf16 %v225_v3, %v217_v2  ;;  %v305_v63 = vld [vmem:[#allocation2 + $0x658] sm:$0xff]  ;;  %v179_v1 = vld [vmem:[#allocation2 + $0x268] sm:$0xff]  ;;  %v577_v2 = vpack.c.bf16 %v288_v59, %v280_v58 }
  0xab   :  { %1093 = vmatprep.mubr.bf16.mxu0 %v544_v8  ;;  %1222 = vmatprep.mubr.bf16.mxu1 %v514_v9  ;;  %v278_v8 = vld [vmem:[#allocation2 + $0x580] sm:$0xff]  ;;  %v3670_v9 = vld [vmem:[#allocation5 + $0x1f8] sm:$0xff]   ;;  %v251_v58 = vld [vmem:[#allocation2 + $0x4a8] sm:$0xff] }
  0xac   :  { %3264 = vmatpush3.bf16.msra.mxu1 %v3665_v39  ;;  %v575_v18 = vpack.c.bf16 %v286_v10, %v278_v8  ;;  %v273_v39 = vld [vmem:[#allocation2 + $0x558] sm:$0xff]  ;;  %v170_v8 = vld [vmem:[#allocation2 + $0x220] sm:$0xff]  ;;  %v259_v59 = vld [vmem:[#allocation2 + $0x4e8] sm:$0xff] }
  0xad   :  { %3265 = vmatprep.subr.bf16.mxu1 %v3666_v49  ;;  %v570_v44 = vpack.c.bf16 %v273_v39, %v265_v38  ;;  %v146_v49 = vld [vmem:[#allocation2 + $0x160] sm:$0xff]  ;;  %v313_v10 = vld [vmem:[#allocation2 + $0x698] sm:$0xff] }
  0xb0   :  { %3266 = vmatpush3.bf16.msra.mxu1 %v3667_v50  ;;  %v281_v50 = vld [vmem:[#allocation2 + $0x598] sm:$0xff] }
  0xb1   :  { %3267 = vmatprep.subr.bf16.mxu1 %v3668_v61  ;;  %v162_v61 = vld [vmem:[#allocation2 + $0x1e0] sm:$0xff] }
  0xb2   :  { %1094 = vmatmul.mubr.bf16.gmra.mrb[28].mxu0 %v543_v23  ;;  %1223 = vmatmul.mubr.bf16.gmra.mrb[28].mxu1 %v513_v24  ;;  %v240_v23 = vld [vmem:[#allocation2 + $0x450] sm:$0xff]  ;;  %v106_v24 = vld [vmem:[#allocation2 + $0x20] sm:$0xff]  ;;  %v515_v3 = vpack.c.bf16 %v162_v61, %v154_v60  ;;  %v125_v60 = vld [vmem:[#allocation2 + $0xb8] sm:$0xff] }
  0xb3   :  { %1101 = vmatprep.mubr.bf16.mxu0 %v552_v25  ;;  %1230 = vmatprep.mubr.bf16.mxu1 %v522_v26  ;;  %v114_v25 = vld [vmem:[#allocation2 + $0x60] sm:$0xff]  ;;  %v249_v26 = vld [vmem:[#allocation2 + $0x498] sm:$0xff]  ;;  %v553_v30 = vpack.c.bf16 %v240_v23, %v232_v22 }
  0xb4   :  { %3268 = vmatpush3.bf16.msra.mxu1 %v3669_v0  ;;  %v491_v31 = vpack.c.bf16 %v114_v25, %v106_v24  ;;  %v562_v32 = vpack.c.bf16 %v257_v27, %v249_v26  ;;  %v171_v0 = vld [vmem:[#allocation2 + $0x228] sm:$0xff]  ;;  %v329_v22 = vld [vmem:[#allocation2 + $0x718] sm:$0xff] }
  0xb5   :  { %3269 = vmatprep.subr.bf16.mxu1 %v3670_v9  ;;  %v178_v9 = vld [vmem:[#allocation2 + $0x260] sm:$0xff]  ;;  %v337_v23 = vld [vmem:[#allocation2 + $0x758] sm:$0xff]  ;;  %v203_v24 = vld [vmem:[#allocation2 + $0x328] sm:$0xff] }
  0xb6   :  { %v523_v15 = vpack.c.bf16 %v178_v9, %v170_v8  ;;  %v211_v25 = vld [vmem:[#allocation2 + $0x368] sm:$0xff]  ;;  %v602_v28 = vpack.c.bf16 %v337_v23, %v329_v22  ;;  %v133_v61 = vld [vmem:[#allocation2 + $0xf8] sm:$0xff] }
  0xb7   :  { %v540_v29 = vpack.c.bf16 %v211_v25, %v203_v24  ;;  %v141_v8 = vld [vmem:[#allocation2 + $0x138] sm:$0xff] }
  0xb8   :  { %3270 = vmatpush3.bf16.msra.mxu1 %v3671_v11  ;;  %v321_v11 = vld [vmem:[#allocation2 + $0x6d8] sm:$0xff] }
  0xb9   :  { %v594_v16 = vpack.c.bf16 %v321_v11, %v313_v10  ;;  %v149_v9 = vld [vmem:[#allocation2 + $0x178] sm:$0xff] }
  0xba   :  { %1102 = vmatmul.mubr.bf16.gmra.mrb[32].mxu0 %v551_v40  ;;  %1231 = vmatmul.mubr.bf16.gmra.mrb[32].mxu1 %v521_v41  ;;  %v139_v40 = vld [vmem:[#allocation2 + $0x128] sm:$0xff]  ;;  %v510_v13 = vpack.c.bf16 %v149_v9, %v141_v8 }
  0xbb   :  { %1109 = vmatprep.mubr.bf16.mxu0 %v560_v42  ;;  %1238 = vmatprep.mubr.bf16.mxu1 %v530_v43  ;;  %v147_v41 = vld [vmem:[#allocation2 + $0x168] sm:$0xff]  ;;  %v561_v42 = vpack.c.bf16 %v256_v35, %v248_v34  ;;  %v499_v43 = vpack.c.bf16 %v130_v37, %v122_v36  ;;  %v345_v34 = vld [vmem:[#allocation2 + $0x798] sm:$0xff] }
  0xbc   :  { %v508_v45 = vpack.c.bf16 %v147_v41, %v139_v40  ;;  %v353_v35 = vld [vmem:[#allocation2 + $0x7d8] sm:$0xff]  ;;  %v219_v36 = vld [vmem:[#allocation2 + $0x3a8] sm:$0xff] }
  0xbd   :  { %v227_v37 = vld [vmem:[#allocation2 + $0x3e8] sm:$0xff]  ;;  %v610_v40 = vpack.c.bf16 %v353_v35, %v345_v34 }
  0xbe   :  { %v548_v41 = vpack.c.bf16 %v227_v37, %v219_v36 }
  0xc2   :  { %1110 = vmatmul.mubr.bf16.gmra.mrb[36].mxu0 %v559_v54  ;;  %1239 = vmatmul.mubr.bf16.gmra.mrb[36].mxu1 %v529_v55  ;;  %v569_v54 = vpack.c.bf16 %v272_v47, %v264_v46  ;;  %v507_v55 = vpack.c.bf16 %v146_v49, %v138_v48  ;;  %v235_v46 = vld [vmem:[#allocation2 + $0x428] sm:$0xff]  ;;  %v109_v48 = vld [vmem:[#allocation2 + $0x38] sm:$0xff] }
  0xc3   :  { %1117 = vmatprep.mubr.bf16.mxu0 %v568_v56  ;;  %1246 = vmatprep.mubr.bf16.mxu1 %v538_v57  ;;  %v578_v56 = vpack.c.bf16 %v289_v51, %v281_v50  ;;  %v516_v57 = vpack.c.bf16 %v163_v53, %v155_v52  ;;  %v243_v47 = vld [vmem:[#allocation2 + $0x468] sm:$0xff]  ;;  %v117_v49 = vld [vmem:[#allocation2 + $0x78] sm:$0xff] }
  0xc4   :  { %v556_v52 = vpack.c.bf16 %v243_v47, %v235_v46  ;;  %v494_v53 = vpack.c.bf16 %v117_v49, %v109_v48 }
  0xca   :  { %1118 = vmatmul.mubr.bf16.gmra.mrb[40].mxu0 %v567_v4  ;;  %1247 = vmatmul.mubr.bf16.gmra.mrb[40].mxu1 %v537_v5  ;;  %v586_v4 = vpack.c.bf16 %v305_v63, %v297_v62  ;;  %v524_v5 = vpack.c.bf16 %v179_v1, %v171_v0  ;;  %v564_v0 = vpack.c.bf16 %v259_v59, %v251_v58  ;;  %v213_v58 = vld [vmem:[#allocation2 + $0x378] sm:$0xff] }
  0xcb   :  { %1125 = vmatprep.mubr.bf16.mxu0 %v576_v6  ;;  %1254 = vmatprep.mubr.bf16.mxu1 %v546_v7  ;;  %v296_v6 = vld [vmem:[#allocation2 + $0x610] sm:$0xff]  ;;  %v502_v1 = vpack.c.bf16 %v133_v61, %v125_v60 }
  0xcc   :  { %v304_v7 = vld [vmem:[#allocation2 + $0x650] sm:$0xff] }
  0xcd   :  { %v585_v14 = vpack.c.bf16 %v304_v7, %v296_v6  ;;  %v267_v6 = vld [vmem:[#allocation2 + $0x528] sm:$0xff] }
  0xce   :  { %v275_v7 = vld [vmem:[#allocation2 + $0x568] sm:$0xff] }
  0xcf   :  { %v572_v12 = vpack.c.bf16 %v275_v7, %v267_v6  ;;  %v229_v6 = vld [vmem:[#allocation2 + $0x3f8] sm:$0xff] }
  0xd2   :  { %1126 = vmatmul.mubr.bf16.gmra.mrb[44].mxu0 %v575_v18  ;;  %1255 = vmatmul.mubr.bf16.gmra.mrb[44].mxu1 %v545_v19  ;;  %v312_v18 = vld [vmem:[#allocation2 + $0x690] sm:$0xff] }
  0xd3   :  { %1262 = vmatprep.mubr.bf16.mxu1 %v554_v20  ;;  %1359 = vmatprep.mubr.bf16.mxu0 %v492_v21  ;;  %v320_v19 = vld [vmem:[#allocation2 + $0x6d0] sm:$0xff]  ;;  %v186_v20 = vld [vmem:[#allocation2 + $0x2a0] sm:$0xff] }
  0xd4   :  { %v194_v21 = vld [vmem:[#allocation2 + $0x2e0] sm:$0xff]  ;;  %v593_v26 = vpack.c.bf16 %v320_v19, %v312_v18  ;;  %v283_v18 = vld [vmem:[#allocation2 + $0x5a8] sm:$0xff] }
  0xd5   :  { %v531_v27 = vpack.c.bf16 %v194_v21, %v186_v20  ;;  %v291_v19 = vld [vmem:[#allocation2 + $0x5e8] sm:$0xff]  ;;  %v157_v20 = vld [vmem:[#allocation2 + $0x1b8] sm:$0xff] }
  0xd6   :  { %v165_v21 = vld [vmem:[#allocation2 + $0x1f8] sm:$0xff]  ;;  %v580_v24 = vpack.c.bf16 %v291_v19, %v283_v18 }
  0xd7   :  { %v518_v25 = vpack.c.bf16 %v165_v21, %v157_v20 }
  0xda   :  { %1263 = vmatmul.mubr.bf16.gmra.mrb[48].mxu1 %v553_v30  ;;  %1360 = vmatmul.mubr.bf16.vlgmr.msra.gmra.mrb[48].mxu0 %v491_v31  ;;  %v328_v30 = vld [vmem:[#allocation2 + $0x710] sm:$0xff] }
  0xdb   :  { %1270 = vmatprep.mubr.bf16.mxu1 %v562_v32  ;;  %1367 = vmatprep.mubr.bf16.mxu0 %v500_v33  ;;  %v336_v31 = vld [vmem:[#allocation2 + $0x750] sm:$0xff]  ;;  %v202_v32 = vld [vmem:[#allocation2 + $0x320] sm:$0xff] }
  0xdc   :  { %v210_v33 = vld [vmem:[#allocation2 + $0x360] sm:$0xff]  ;;  %v601_v38 = vpack.c.bf16 %v336_v31, %v328_v30  ;;  %v299_v30 = vld [vmem:[#allocation2 + $0x628] sm:$0xff] }
  0xdd   :  { %v539_v39 = vpack.c.bf16 %v210_v33, %v202_v32  ;;  %v307_v31 = vld [vmem:[#allocation2 + $0x668] sm:$0xff]  ;;  %v173_v32 = vld [vmem:[#allocation2 + $0x238] sm:$0xff] }
  0xde   :  { %v181_v33 = vld [vmem:[#allocation2 + $0x278] sm:$0xff]  ;;  %v588_v36 = vpack.c.bf16 %v307_v31, %v299_v30 }
  0xdf   :  { %v526_v37 = vpack.c.bf16 %v181_v33, %v173_v32  ;;  %v236_v33 = vld [vmem:[#allocation2 + $0x430] sm:$0xff] }
  0xe2   :  { %1271 = vmatmul.mubr.bf16.gmra.mrb[52].mxu1 %v561_v42  ;;  %1368 = vmatmul.mubr.bf16.gmra.mrb[52].mxu0 %v499_v43  ;;  %v344_v42 = vld [vmem:[#allocation2 + $0x790] sm:$0xff] }
  0xe3   :  { %1278 = vmatprep.mubr.bf16.mxu1 %v570_v44  ;;  %1375 = vmatprep.mubr.bf16.mxu0 %v508_v45  ;;  %v352_v43 = vld [vmem:[#allocation2 + $0x7d0] sm:$0xff]  ;;  %v218_v44 = vld [vmem:[#allocation2 + $0x3a0] sm:$0xff] }
  0xe4   :  { %v226_v45 = vld [vmem:[#allocation2 + $0x3e0] sm:$0xff]  ;;  %v609_v50 = vpack.c.bf16 %v352_v43, %v344_v42  ;;  %v315_v42 = vld [vmem:[#allocation2 + $0x6a8] sm:$0xff] }
  0xe5   :  { %v547_v51 = vpack.c.bf16 %v226_v45, %v218_v44  ;;  %v323_v43 = vld [vmem:[#allocation2 + $0x6e8] sm:$0xff]  ;;  %v189_v44 = vld [vmem:[#allocation2 + $0x2b8] sm:$0xff] }
  0xe6   :  { %v197_v45 = vld [vmem:[#allocation2 + $0x2f8] sm:$0xff]  ;;  %v596_v48 = vpack.c.bf16 %v323_v43, %v315_v42 }
  0xe7   :  { %v534_v49 = vpack.c.bf16 %v197_v45, %v189_v44 }
  0xea   :  { %1279 = vmatmul.mubr.bf16.gmra.mrb[56].mxu1 %v569_v54  ;;  %1376 = vmatmul.mubr.bf16.gmra.mrb[56].mxu0 %v507_v55  ;;  %v234_v54 = vld [vmem:[#allocation2 + $0x420] sm:$0xff] }
  0xeb   :  { %1286 = vmatprep.mubr.bf16.mxu1 %v578_v56  ;;  %1383 = vmatprep.mubr.bf16.mxu0 %v516_v57  ;;  %v242_v55 = vld [vmem:[#allocation2 + $0x460] sm:$0xff]  ;;  %v108_v56 = vld [vmem:[#allocation2 + $0x30] sm:$0xff] }
  0xec   :  { %v116_v57 = vld [vmem:[#allocation2 + $0x70] sm:$0xff]  ;;  %v555_v62 = vpack.c.bf16 %v242_v55, %v234_v54  ;;  %v331_v54 = vld [vmem:[#allocation2 + $0x728] sm:$0xff]  ;;  %v3672_v55 = vld [vmem:[#allocation7] sm:$0xff]  }
  0xed   :  { %v493_v63 = vpack.c.bf16 %v116_v57, %v108_v56  ;;  %v339_v56 = vld [vmem:[#allocation2 + $0x768] sm:$0xff]  ;;  %v205_v57 = vld [vmem:[#allocation2 + $0x338] sm:$0xff]  ;;  %3439 = vmatprep.subr.bf16.mxu0 %v3672_v55 }
  0xee   :  { %3440 = vmatpush3.bf16.msra.mxu0 %v3672_v55  ;;  %v604_v61 = vpack.c.bf16 %v339_v56, %v331_v54  ;;  %v269_v54 = vld [vmem:[#allocation2 + $0x538] sm:$0xff] }
  0xef   :  { %v277_v55 = vld [vmem:[#allocation2 + $0x578] sm:$0xff] }
  0xf2   :  { %1287 = vmatmul.mubr.bf16.gmra.mrb[60].mxu1 %v577_v2  ;;  %1384 = vmatmul.mubr.bf16.gmra.mrb[60].mxu0 %v515_v3  ;;  %v250_v2 = vld [vmem:[#allocation2 + $0x4a0] sm:$0xff] }
  0xf3   :  { %1294 = vmatprep.mubr.bf16.mxu1 %v586_v4  ;;  %1391 = vmatprep.mubr.bf16.mxu0 %v524_v5  ;;  %v258_v3 = vld [vmem:[#allocation2 + $0x4e0] sm:$0xff]  ;;  %v124_v4 = vld [vmem:[#allocation2 + $0xb0] sm:$0xff] }
  0xf4   :  { %v132_v5 = vld [vmem:[#allocation2 + $0xf0] sm:$0xff]  ;;  %v563_v10 = vpack.c.bf16 %v258_v3, %v250_v2  ;;  %v347_v3 = vld [vmem:[#allocation2 + $0x7a8] sm:$0xff] }
  0xf5   :  { %v501_v11 = vpack.c.bf16 %v132_v5, %v124_v4  ;;  %v212_v2 = vld [vmem:[#allocation2 + $0x370] sm:$0xff]  ;;  %v355_v4 = vld [vmem:[#allocation2 + $0x7e8] sm:$0xff]  ;;  %v221_v5 = vld [vmem:[#allocation2 + $0x3b8] sm:$0xff] }
  0xf6   :  { %v612_v9 = vpack.c.bf16 %v355_v4, %v347_v3 }
  0xfa   :  { %1295 = vmatmul.mubr.bf16.gmra.mrb[64].mxu1 %v585_v14  ;;  %1392 = vmatmul.mubr.bf16.gmra.mrb[64].mxu0 %v523_v15  ;;  %v266_v14 = vld [vmem:[#allocation2 + $0x520] sm:$0xff] }
  0xfb   :  { %1302 = vmatprep.mubr.bf16.mxu1 %v594_v16  ;;  %1399 = vmatprep.mubr.bf16.mxu0 %v532_v17  ;;  %v274_v15 = vld [vmem:[#allocation2 + $0x560] sm:$0xff]  ;;  %v140_v16 = vld [vmem:[#allocation2 + $0x130] sm:$0xff] }
  0xfc   :  { %v148_v17 = vld [vmem:[#allocation2 + $0x170] sm:$0xff]  ;;  %v571_v22 = vpack.c.bf16 %v274_v15, %v266_v14  ;;  %v3673_v15 = vld [vmem:[#allocation7 + $0x8] sm:$0xff]  }
  0xfd   :  { %v509_v23 = vpack.c.bf16 %v148_v17, %v140_v16  ;;  %v228_v14 = vld [vmem:[#allocation2 + $0x3f0] sm:$0xff]  ;;  %v237_v16 = vld [vmem:[#allocation2 + $0x438] sm:$0xff]  ;;  %3441 = vmatprep.subr.bf16.mxu0 %v3673_v15 }
  0xfe   :  { %v245_v17 = vld [vmem:[#allocation2 + $0x478] sm:$0xff]  ;;  %3442 = vmatpush3.bf16.msra.mxu0 %v3673_v15 }
 0x102   :  { %1303 = vmatmul.mubr.bf16.gmra.mrb[68].mxu1 %v593_v26  ;;  %1400 = vmatmul.mubr.bf16.gmra.mrb[68].mxu0 %v531_v27  ;;  %v282_v26 = vld [vmem:[#allocation2 + $0x5a0] sm:$0xff] }
 0x103   :  { %1310 = vmatprep.mubr.bf16.mxu1 %v602_v28  ;;  %1407 = vmatprep.mubr.bf16.mxu0 %v540_v29  ;;  %v290_v27 = vld [vmem:[#allocation2 + $0x5e0] sm:$0xff]  ;;  %v156_v28 = vld [vmem:[#allocation2 + $0x1b0] sm:$0xff] }
 0x104   :  { %v164_v29 = vld [vmem:[#allocation2 + $0x1f0] sm:$0xff]  ;;  %v579_v34 = vpack.c.bf16 %v290_v27, %v282_v26  ;;  %v558_v26 = vpack.c.bf16 %v245_v17, %v237_v16 }
 0x105   :  { %v517_v35 = vpack.c.bf16 %v164_v29, %v156_v28 }
 0x10a   :  { %1311 = vmatmul.mubr.bf16.gmra.mrb[72].mxu1 %v601_v38  ;;  %1408 = vmatmul.mubr.bf16.gmra.mrb[72].mxu0 %v539_v39  ;;  %v298_v38 = vld [vmem:[#allocation2 + $0x620] sm:$0xff] }
 0x10b   :  { %1318 = vmatprep.mubr.bf16.mxu1 %v610_v40  ;;  %1415 = vmatprep.mubr.bf16.mxu0 %v548_v41  ;;  %v306_v39 = vld [vmem:[#allocation2 + $0x660] sm:$0xff]  ;;  %v172_v40 = vld [vmem:[#allocation2 + $0x230] sm:$0xff] }
 0x10c   :  { %v180_v41 = vld [vmem:[#allocation2 + $0x270] sm:$0xff]  ;;  %v587_v46 = vpack.c.bf16 %v306_v39, %v298_v38 }
 0x10d   :  { %v525_v47 = vpack.c.bf16 %v180_v41, %v172_v40 }
 0x112   :  { %1319 = vmatmul.mubr.bf16.gmra.mrb[76].mxu1 %v609_v50  ;;  %1416 = vmatmul.mubr.bf16.gmra.mrb[76].mxu0 %v547_v51  ;;  %v314_v50 = vld [vmem:[#allocation2 + $0x6a0] sm:$0xff] }
 0x113   :  { %1423 = vmatprep.mubr.bf16.mxu0 %v556_v52  ;;  %1520 = vmatprep.mubr.bf16.mxu1 %v494_v53  ;;  %v322_v51 = vld [vmem:[#allocation2 + $0x6e0] sm:$0xff]  ;;  %v188_v52 = vld [vmem:[#allocation2 + $0x2b0] sm:$0xff] }
 0x114   :  { %v196_v53 = vld [vmem:[#allocation2 + $0x2f0] sm:$0xff]  ;;  %v595_v59 = vpack.c.bf16 %v322_v51, %v314_v50 }
 0x115   :  { %v533_v60 = vpack.c.bf16 %v196_v53, %v188_v52  ;;  %v252_v51 = vld [vmem:[#allocation2 + $0x4b0] sm:$0xff] }
 0x116   :  { %v260_v52 = vld [vmem:[#allocation2 + $0x4f0] sm:$0xff] }
 0x117   :  { %v3674_v53 = vld [vmem:[#allocation7 + $0x10] sm:$0xff]  }
 0x118   :  { %3443 = vmatprep.subr.bf16.mxu0 %v3674_v53 }
 0x119   :  { %3444 = vmatpush3.bf16.msra.mxu0 %v3674_v53 }
 0x11a   :  { %1424 = vmatmul.mubr.bf16.gmra.mrb[80].mxu0 %v555_v62  ;;  %1521 = vmatmul.mubr.bf16.vlgmr.msra.gmra.mrb[80].mxu1 %v493_v63  ;;  %v542_v62 = vpack.c.bf16 %v213_v58, %v205_v57  ;;  %v330_v63 = vld [vmem:[#allocation2 + $0x720] sm:$0xff] }
 0x11b   :  { %1431 = vmatprep.mubr.bf16.mxu0 %v564_v0  ;;  %1528 = vmatprep.mubr.bf16.mxu1 %v502_v1  ;;  %v338_v0 = vld [vmem:[#allocation2 + $0x760] sm:$0xff]  ;;  %v204_v1 = vld [vmem:[#allocation2 + $0x330] sm:$0xff] }
 0x11c   :  { %v603_v7 = vpack.c.bf16 %v338_v0, %v330_v63  ;;  %v541_v8 = vpack.c.bf16 %v212_v2, %v204_v1  ;;  %v574_v63 = vpack.c.bf16 %v277_v55, %v269_v54 }
 0x122   :  { %1432 = vmatmul.mubr.bf16.gmra.mrb[84].mxu0 %v563_v10  ;;  %1529 = vmatmul.mubr.bf16.gmra.mrb[84].mxu1 %v501_v11  ;;  %v550_v10 = vpack.c.bf16 %v229_v6, %v221_v5  ;;  %v346_v11 = vld [vmem:[#allocation2 + $0x7a0] sm:$0xff]  ;;  %v268_v6 = vld [vmem:[#allocation2 + $0x530] sm:$0xff] }
 0x123   :  { %1439 = vmatprep.mubr.bf16.mxu0 %v572_v12  ;;  %1536 = vmatprep.mubr.bf16.mxu1 %v510_v13  ;;  %v354_v12 = vld [vmem:[#allocation2 + $0x7e0] sm:$0xff]  ;;  %v220_v13 = vld [vmem:[#allocation2 + $0x3b0] sm:$0xff] }
 0x124   :  { %v611_v21 = vpack.c.bf16 %v354_v12, %v346_v11 }
 0x12a   :  { %1440 = vmatmul.mubr.bf16.gmra.mrb[88].mxu0 %v571_v22  ;;  %1537 = vmatmul.mubr.bf16.gmra.mrb[88].mxu1 %v509_v23  ;;  %v549_v22 = vpack.c.bf16 %v228_v14, %v220_v13 }
 0x12b   :  { %1447 = vmatprep.mubr.bf16.mxu0 %v580_v24  ;;  %1544 = vmatprep.mubr.bf16.mxu1 %v518_v25 }
 0x132   :  { %1448 = vmatmul.mubr.bf16.gmra.mrb[92].mxu0 %v579_v34  ;;  %1545 = vmatmul.mubr.bf16.gmra.mrb[92].mxu1 %v517_v35  ;;  %v244_v34 = vld [vmem:[#allocation2 + $0x470] sm:$0xff]  ;;  %v253_v35 = vld [vmem:[#allocation2 + $0x4b8] sm:$0xff] }
 0x133   :  { %1455 = vmatprep.mubr.bf16.mxu0 %v588_v36  ;;  %1552 = vmatprep.mubr.bf16.mxu1 %v526_v37  ;;  %v261_v36 = vld [vmem:[#allocation2 + $0x4f8] sm:$0xff]  ;;  %v557_v40 = vpack.c.bf16 %v244_v34, %v236_v33 }
 0x134   :  { %v566_v44 = vpack.c.bf16 %v261_v36, %v253_v35  ;;  %v309_v33 = vld [vmem:[#allocation2 + $0x678] sm:$0xff] }
 0x13a   :  { %1456 = vmatmul.mubr.bf16.gmra.mrb[96].mxu0 %v587_v46  ;;  %1553 = vmatmul.mubr.bf16.gmra.mrb[96].mxu1 %v525_v47 }
 0x13b   :  { %1463 = vmatprep.mubr.bf16.mxu0 %v596_v48  ;;  %1560 = vmatprep.mubr.bf16.mxu1 %v534_v49 }
 0x142   :  { %1464 = vmatmul.mubr.bf16.gmra.mrb[100].mxu0 %v595_v59  ;;  %1561 = vmatmul.mubr.bf16.gmra.mrb[100].mxu1 %v533_v60  ;;  %v565_v59 = vpack.c.bf16 %v260_v52, %v252_v51 }
 0x143   :  { %1471 = vmatprep.mubr.bf16.mxu0 %v604_v61  ;;  %1568 = vmatprep.mubr.bf16.mxu1 %v542_v62 }
 0x14a   :  { %1472 = vmatmul.mubr.bf16.gmra.mrb[104].mxu0 %v603_v7  ;;  %1569 = vmatmul.mubr.bf16.gmra.mrb[104].mxu1 %v541_v8  ;;  %v276_v7 = vld [vmem:[#allocation2 + $0x570] sm:$0xff]  ;;  %v285_v8 = vld [vmem:[#allocation2 + $0x5b8] sm:$0xff] }
 0x14b   :  { %1479 = vmatprep.mubr.bf16.mxu0 %v612_v9  ;;  %1576 = vmatprep.mubr.bf16.mxu1 %v550_v10  ;;  %v293_v9 = vld [vmem:[#allocation2 + $0x5f8] sm:$0xff]  ;;  %v573_v13 = vpack.c.bf16 %v276_v7, %v268_v6 }
 0x14c   :  { %v582_v17 = vpack.c.bf16 %v293_v9, %v285_v8 }
 0x14d   :  { %v3007_v18 = vpop.f32.mrb[0].mxu1  ;;  %v2935_v19 = vpop.f32.mrb[0].mxu0 }
 0x14e   :  { %v3008_v20 = vpop.f32.mrb[1].mxu1  ;;  %v2936_v23 = vpop.f32.mrb[1].mxu0 }
 0x14f   :  { %v3975_v24 = vadd.f32 %v3008_v20, %v3007_v18  ;;  %v3010_v25 = vpop.f32.mrb[2].mxu1  ;;  %v3977_v27 = vadd.f32 %v2936_v23, %v2935_v19  ;;  %v2938_v28 = vpop.f32.mrb[2].mxu0 }
 0x150   :  { %v3011_v29 = vpop.f32.mrb[3].mxu1  ;;  %v2939_v30 = vpop.f32.mrb[3].mxu0 }
 0x151   :  { %v3979_v31 = vadd.f32 %v3011_v29, %v3010_v25  ;;  %v3981_v32 = vadd.f32 %v2939_v30, %v2938_v28  ;;  %v284_v25 = vld [vmem:[#allocation2 + $0x5b0] sm:$0xff]  ;;  %v3675_v28 = vld [vmem:[#allocation7 + $0x18] sm:$0xff]   ;;  %v4010_v29 = vld [vmem:[%s4398_s2] ss:$0 sm:$0xff] }
 0x152   :  { %1480 = vmatmul.mubr.bf16.gmra.mrb[108].mxu0 %v611_v21  ;;  %1577 = vmatmul.mubr.bf16.gmra.mrb[108].mxu1 %v549_v22  ;;  %v301_v30 = vld [vmem:[#allocation2 + $0x638] sm:$0xff]  ;;  %v1040_v34 = vadd.f32 %v3977_v27, %v4010_v29 }
 0x153   :  { %1584 = vmatprep.mubr.bf16.mxu1 %v558_v26  ;;  %v292_v26 = vld [vmem:[#allocation2 + $0x5f0] sm:$0xff]  ;;  %3445 = vmatprep.subr.bf16.mxu0 %v3675_v28 }
 0x154   :  { %3446 = vmatpush3.bf16.msra.mxu0 %v3675_v28 }
 0x155   :  { %v3013_v37 = vpop.f32.mrb[4].mxu1  ;;  %v2941_v38 = vpop.f32.mrb[4].mxu0 }
 0x156   :  { %v3014_v39 = vpop.f32.mrb[5].mxu1  ;;  %v2942_v41 = vpop.f32.mrb[5].mxu0 }
 0x157   :  { %v3983_v42 = vadd.f32 %v3014_v39, %v3013_v37  ;;  %v3016_v43 = vpop.f32.mrb[6].mxu1  ;;  %v3985_v45 = vadd.f32 %v2942_v41, %v2941_v38  ;;  %v2944_v46 = vpop.f32.mrb[6].mxu0  ;;  %v581_v38 = vpack.c.bf16 %v292_v26, %v284_v25  ;;  %v333_v25 = vld [vmem:[#allocation2 + $0x738] sm:$0xff] }
 0x158   :  { %v3017_v47 = vpop.f32.mrb[7].mxu1  ;;  %v2945_v48 = vpop.f32.mrb[7].mxu0  ;;  %v341_v26 = vld [vmem:[#allocation2 + $0x778] sm:$0xff] }
 0x159   :  { %v3987_v49 = vadd.f32 %v3017_v47, %v3016_v43  ;;  %v3989_v50 = vadd.f32 %v2945_v48, %v2944_v46  ;;  %v3676_v48 = vld [vmem:[#allocation7 + $0x20] sm:$0xff]  }
 0x15a   :  { %1585 = vmatmul.mubr.bf16.gmra.mrb[112].mxu1 %v557_v40  ;;  %v1043_v40 = vadd.f32 %v3981_v32, %v4010_v29  ;;  %3447 = vmatprep.subr.bf16.mxu0 %v3676_v48  ;;  %v300_v32 = vld [vmem:[#allocation2 + $0x630] sm:$0xff] }
 0x15b   :  { %1592 = vmatprep.mubr.bf16.mxu1 %v566_v44  ;;  %v590_v44 = vpack.c.bf16 %v309_v33, %v301_v30  ;;  %3448 = vmatpush3.bf16.msra.mxu0 %v3676_v48  ;;  %v1051_v6 = vadd.f32 %v3989_v50, %v4010_v29  ;;  %v316_v50 = vld [vmem:[#allocation2 + $0x6b0] sm:$0xff] }
 0x15d   :  { %v3019_v56 = vpop.f32.mrb[8].mxu1  ;;  %v2947_v57 = vpop.f32.mrb[8].mxu0 }
 0x15e   :  { %v3020_v58 = vpop.f32.mrb[9].mxu1  ;;  %v2948_v60 = vpop.f32.mrb[9].mxu0 }
 0x15f   :  { %v3991_v61 = vadd.f32 %v3020_v58, %v3019_v56  ;;  %v3022_v62 = vpop.f32.mrb[10].mxu1  ;;  %v3993_v0 = vadd.f32 %v2948_v60, %v2947_v57  ;;  %v2950_v1 = vpop.f32.mrb[10].mxu0  ;;  %v308_v56 = vld [vmem:[#allocation2 + $0x670] sm:$0xff]  ;;  %v3677_v57 = vld [vmem:[#allocation7 + $0x28] sm:$0xff]   ;;  %v317_v58 = vld [vmem:[#allocation2 + $0x6b8] sm:$0xff]  ;;  %v1048_v60 = vadd.f32 %v3985_v45, %v4010_v29 }
 0x160   :  { %v3023_v2 = vpop.f32.mrb[11].mxu1  ;;  %v2951_v3 = vpop.f32.mrb[11].mxu0  ;;  %3449 = vmatprep.subr.bf16.mxu0 %v3677_v57 }
 0x161   :  { %v3995_v4 = vadd.f32 %v3023_v2, %v3022_v62  ;;  %v3997_v5 = vadd.f32 %v2951_v3, %v2950_v1  ;;  %v589_v2 = vpack.c.bf16 %v308_v56, %v300_v32  ;;  %3450 = vmatpush3.bf16.msra.mxu0 %v3677_v57  ;;  %v1056_v28 = vadd.f32 %v3993_v0, %v4010_v29  ;;  %v340_v32 = vld [vmem:[#allocation2 + $0x770] sm:$0xff]  ;;  %v357_v56 = vld [vmem:[#allocation2 + $0x7f8] sm:$0xff] }
 0x162   :  { %1593 = vmatmul.mubr.bf16.gmra.mrb[116].mxu1 %v565_v59  ;;  %v325_v59 = vld [vmem:[#allocation2 + $0x6f8] sm:$0xff] }
 0x163   :  { %1600 = vmatprep.mubr.bf16.mxu1 %v574_v63  ;;  %v598_v9 = vpack.c.bf16 %v325_v59, %v317_v58 }
 0x165   :  { %v3025_v10 = vpop.f32.mrb[12].mxu1  ;;  %v2953_v11 = vpop.f32.mrb[12].mxu0 }
 0x166   :  { %v3026_v12 = vpop.f32.mrb[13].mxu1  ;;  %v2954_v14 = vpop.f32.mrb[13].mxu0 }
 0x167   :  { %v3999_v15 = vadd.f32 %v3026_v12, %v3025_v10  ;;  %v3028_v16 = vpop.f32.mrb[14].mxu1  ;;  %v4001_v18 = vadd.f32 %v2954_v14, %v2953_v11  ;;  %v2956_v19 = vpop.f32.mrb[14].mxu0  ;;  %v3678_v12 = vld [vmem:[#allocation7 + $0x30] sm:$0xff]  }
 0x168   :  { %v3029_v20 = vpop.f32.mrb[15].mxu1  ;;  %v2957_v21 = vpop.f32.mrb[15].mxu0  ;;  %3451 = vmatprep.subr.bf16.mxu0 %v3678_v12 }
 0x169   :  { %v4003_v22 = vadd.f32 %v3029_v20, %v3028_v16  ;;  %v4005_v23 = vadd.f32 %v2957_v21, %v2956_v19  ;;  %3452 = vmatpush3.bf16.msra.mxu0 %v3678_v12  ;;  %v324_v20 = vld [vmem:[#allocation2 + $0x6f0] sm:$0xff]  ;;  %v3679_v21 = vld [vmem:[#allocation7 + $0x38] sm:$0xff]   ;;  %v1064_v57 = vadd.f32 %v4001_v18, %v4010_v29 }
 0x16a   :  { %1601 = vmatmul.mubr.bf16.gmra.mrb[120].mxu1 %v573_v13  ;;  %3453 = vmatprep.subr.bf16.mxu0 %v3679_v21 }
 0x16b   :  { %1608 = vmatprep.mubr.bf16.mxu1 %v582_v17 }
 0x16d   :  { %v3047_v35 = vpop.f32.mrb[16].mxu1  ;;  %v2959_v36 = vpop.f32.mrb[16].mxu0  ;;  %3454 = vmatpush3.bf16.msra.mxu0 %v3679_v21 }
 0x16e   :  { %v3048_v37 = vpop.f32.mrb[17].mxu1  ;;  %v2960_v39 = vpop.f32.mrb[17].mxu0 }
 0x16f   :  { %v3049_v41 = vadd.f32 %v3048_v37, %v3047_v35  ;;  %v3050_v43 = vpop.f32.mrb[18].mxu1  ;;  %v4016_v46 = vadd.f32 %v2960_v39, %v2959_v36  ;;  %v2962_v47 = vpop.f32.mrb[18].mxu0  ;;  %v597_v35 = vpack.c.bf16 %v324_v20, %v316_v50  ;;  %v1059_v37 = vadd.f32 %v3997_v5, %v4010_v29  ;;  %v349_v5 = vld [vmem:[#allocation2 + $0x7b8] sm:$0xff]  ;;  %v356_v50 = vld [vmem:[#allocation2 + $0x7f0] sm:$0xff] }
 0x170   :  { %v3051_v51 = vpop.f32.mrb[19].mxu1  ;;  %v2963_v52 = vpop.f32.mrb[19].mxu0 }
 0x171   :  { %v4018_v27 = vadd.f32 %v3049_v41, %v1040_v34  ;;  %v3052_v53 = vadd.f32 %v3051_v51, %v3050_v43  ;;  %v4020_v54 = vadd.f32 %v2963_v52, %v2962_v47 }
 0x172   :  { %1609 = vmatmul.mubr.bf16.gmra.mrb[124].mxu1 %v581_v38 }
 0x173   :  { %v4022_v55 = vadd.f32 %v3052_v53, %v1043_v40  ;;  %1616 = vmatprep.mubr.bf16.mxu1 %v590_v44  ;;  %v606_v40 = vpack.c.bf16 %v341_v26, %v333_v25  ;;  %v332_v53 = vld [vmem:[#allocation2 + $0x730] sm:$0xff] }
 0x175   :  { %v3053_v62 = vpop.f32.mrb[20].mxu1  ;;  %v2965_v63 = vpop.f32.mrb[20].mxu0 }
 0x176   :  { %v3054_v1 = vpop.f32.mrb[21].mxu1  ;;  %v2966_v3 = vpop.f32.mrb[21].mxu0 }
 0x177   :  { %v3055_v7 = vadd.f32 %v3054_v1, %v3053_v62  ;;  %v3056_v8 = vpop.f32.mrb[22].mxu1  ;;  %v4028_v10 = vadd.f32 %v2966_v3, %v2965_v63  ;;  %v2968_v11 = vpop.f32.mrb[22].mxu0  ;;  %v605_v62 = vpack.c.bf16 %v340_v32, %v332_v53  ;;  %v1067_v1 = vadd.f32 %v4005_v23, %v4010_v29 }
 0x178   :  { %v3057_v13 = vpop.f32.mrb[23].mxu1  ;;  %v2969_v14 = vpop.f32.mrb[23].mxu0  ;;  %v1072_v23 = vadd.f32 %v4016_v46, %v4010_v29 }
 0x179   :  { %v4030_v45 = vadd.f32 %v3055_v7, %v1048_v60  ;;  %v3058_v16 = vadd.f32 %v3057_v13, %v3056_v8  ;;  %v4032_v17 = vadd.f32 %v2969_v14, %v2968_v11 }
 0x17a   :  { %1617 = vmatmul.mubr.bf16.gmra.mrb[128].mxu1 %v589_v2 }
 0x17b   :  { %v4034_v19 = vadd.f32 %v3058_v16, %v1051_v6  ;;  %1624 = vmatprep.mubr.bf16.mxu1 %v598_v9  ;;  %v614_v6 = vpack.c.bf16 %v357_v56, %v349_v5  ;;  %v348_v16 = vld [vmem:[#allocation2 + $0x7b0] sm:$0xff]  ;;  %v1083_v32 = vadd.f32 %v4032_v17, %v4010_v29 }
 0x17c   :  { %v613_v26 = vpack.c.bf16 %v356_v50, %v348_v16 }
 0x17d   :  { %v3059_v30 = vpop.f32.mrb[24].mxu1  ;;  %v2971_v33 = vpop.f32.mrb[24].mxu0 }
 0x17e   :  { %v3060_v34 = vpop.f32.mrb[25].mxu1  ;;  %v2972_v36 = vpop.f32.mrb[25].mxu0 }
 0x17f   :  { %v3061_v38 = vadd.f32 %v3060_v34, %v3059_v30  ;;  %v3062_v39 = vpop.f32.mrb[26].mxu1  ;;  %v4040_v41 = vadd.f32 %v2972_v36, %v2971_v33  ;;  %v2974_v43 = vpop.f32.mrb[26].mxu0  ;;  %v1075_v30 = vadd.f32 %v4020_v54, %v4010_v29 }
 0x180   :  { %v3063_v44 = vpop.f32.mrb[27].mxu1  ;;  %v2975_v47 = vpop.f32.mrb[27].mxu0 }
 0x181   :  { %v4042_v48 = vadd.f32 %v3061_v38, %v1056_v28  ;;  %v3064_v0 = vadd.f32 %v3063_v44, %v3062_v39  ;;  %v4044_v51 = vadd.f32 %v2975_v47, %v2974_v43  ;;  %v1080_v44 = vadd.f32 %v4028_v10, %v4010_v29 }
 0x182   :  { %1625 = vmatmul.mubr.bf16.gmra.mrb[132].mxu1 %v597_v35  ;;  %v1088_v10 = vadd.f32 %v4040_v41, %v4010_v29 }
 0x183   :  { %v4046_v52 = vadd.f32 %v3064_v0, %v1059_v37  ;;  %1632 = vmatprep.mubr.bf16.mxu1 %v606_v40  ;;  %v1091_v17 = vadd.f32 %v4044_v51, %v4010_v29 }
 0x185   :  { %v3065_v58 = vpop.f32.mrb[28].mxu1  ;;  %v2977_v59 = vpop.f32.mrb[28].mxu0 }
 0x186   :  { %v3066_v60 = vpop.f32.mrb[29].mxu1  ;;  %v2978_v63 = vpop.f32.mrb[29].mxu0 }
 0x187   :  { %v3067_v2 = vadd.f32 %v3066_v60, %v3065_v58  ;;  %v3068_v3 = vpop.f32.mrb[30].mxu1  ;;  %v2979_v7 = vadd.f32 %v2978_v63, %v2977_v59  ;;  %v2980_v8 = vpop.f32.mrb[30].mxu0 }
 0x188   :  { %v3069_v9 = vpop.f32.mrb[31].mxu1  ;;  %v2981_v11 = vpop.f32.mrb[31].mxu0 }
 0x189   :  { %v4052_v12 = vadd.f32 %v3067_v2, %v1064_v57  ;;  %v3070_v13 = vadd.f32 %v3069_v9, %v3068_v3  ;;  %v2982_v14 = vadd.f32 %v2981_v11, %v2980_v8  ;;  %v1096_v41 = vadd.f32 %v2979_v7, %v4010_v29 }
 0x18a   :  { %1633 = vmatmul.mubr.bf16.gmra.mrb[136].mxu1 %v605_v62 }
 0x18b   :  { %v4054_v18 = vadd.f32 %v3070_v13, %v1067_v1  ;;  %1640 = vmatprep.mubr.bf16.mxu1 %v614_v6  ;;  %v1099_v51 = vadd.f32 %v2982_v14, %v4010_v29 }
 0x18d   :  { %v3071_v20 = vpop.f32.mrb[32].mxu1  ;;  %v2983_v21 = vpop.f32.mrb[32].mxu0 }
 0x18e   :  { %v3072_v25 = vpop.f32.mrb[33].mxu1  ;;  %v2984_v28 = vpop.f32.mrb[33].mxu0 }
 0x18f   :  { %v3073_v33 = vadd.f32 %v3072_v25, %v3071_v20  ;;  %v3074_v34 = vpop.f32.mrb[34].mxu1  ;;  %v2985_v35 = vadd.f32 %v2984_v28, %v2983_v21  ;;  %v2986_v36 = vpop.f32.mrb[34].mxu0 }
 0x190   :  { %v3075_v37 = vpop.f32.mrb[35].mxu1  ;;  %v2987_v38 = vpop.f32.mrb[35].mxu0 }
 0x191   :  { %v4060_v39 = vadd.f32 %v3073_v33, %v1072_v23  ;;  %v3076_v40 = vadd.f32 %v3075_v37, %v3074_v34  ;;  %v2988_v43 = vadd.f32 %v2987_v38, %v2986_v36  ;;  %v1104_v7 = vadd.f32 %v2985_v35, %v4010_v29 }
 0x192   :  { %1641 = vmatmul.mubr.bf16.gmra.mrb[140].mxu1 %v613_v26 }
 0x193   :  { %v4062_v46 = vadd.f32 %v3076_v40, %v1075_v30  ;;  %v1107_v14 = vadd.f32 %v2988_v43, %v4010_v29 }
 0x195   :  { %v3077_v47 = vpop.f32.mrb[36].mxu1  ;;  %v2989_v0 = vpop.f32.mrb[36].mxu0 }
 0x196   :  { %v3078_v53 = vpop.f32.mrb[37].mxu1  ;;  %v2990_v54 = vpop.f32.mrb[37].mxu0 }
 0x197   :  { %v3079_v5 = vadd.f32 %v3078_v53, %v3077_v47  ;;  %v3080_v56 = vpop.f32.mrb[38].mxu1  ;;  %v2991_v57 = vadd.f32 %v2990_v54, %v2989_v0  ;;  %v2992_v58 = vpop.f32.mrb[38].mxu0 }
 0x198   :  { %v3081_v59 = vpop.f32.mrb[39].mxu1  ;;  %v2993_v60 = vpop.f32.mrb[39].mxu0 }
 0x199   :  { %v4068_v62 = vadd.f32 %v3079_v5, %v1080_v44  ;;  %v3082_v63 = vadd.f32 %v3081_v59, %v3080_v56  ;;  %v2994_v1 = vadd.f32 %v2993_v60, %v2992_v58  ;;  %v1112_v43 = vadd.f32 %v2991_v57, %v4010_v29 }
 0x19b   :  { %v4070_v2 = vadd.f32 %v3082_v63, %v1083_v32 }
 0x19d   :  { %v3083_v3 = vpop.f32.mrb[40].mxu1  ;;  %v2995_v6 = vpop.f32.mrb[40].mxu0 }
 0x19e   :  { %v3084_v8 = vpop.f32.mrb[41].mxu1  ;;  %v2996_v9 = vpop.f32.mrb[41].mxu0 }
 0x19f   :  { %v3085_v11 = vadd.f32 %v3084_v8, %v3083_v3  ;;  %v3086_v13 = vpop.f32.mrb[42].mxu1  ;;  %v2997_v16 = vadd.f32 %v2996_v9, %v2995_v6  ;;  %v2998_v50 = vpop.f32.mrb[42].mxu0 }
 0x1a0   :  { %v3087_v23 = vpop.f32.mrb[43].mxu1  ;;  %v2999_v20 = vpop.f32.mrb[43].mxu0 }
 0x1a1   :  { %v4076_v21 = vadd.f32 %v3085_v11, %v1088_v10  ;;  %v3088_v25 = vadd.f32 %v3087_v23, %v3086_v13  ;;  %v3000_v26 = vadd.f32 %v2999_v20, %v2998_v50 }
 0x1a3   :  { %v4078_v28 = vadd.f32 %v3088_v25, %v1091_v17 }
 0x1a5   :  { %v3089_v30 = vpop.f32.mrb[44].mxu1  ;;  %v3001_v33 = vpop.f32.mrb[44].mxu0 }
 0x1a6   :  { %v3090_v34 = vpop.f32.mrb[45].mxu1  ;;  %v3002_v36 = vpop.f32.mrb[45].mxu0 }
 0x1a7   :  { %v3091_v37 = vadd.f32 %v3090_v34, %v3089_v30  ;;  %v3092_v38 = vpop.f32.mrb[46].mxu1  ;;  %v3003_v40 = vadd.f32 %v3002_v36, %v3001_v33  ;;  %v3004_v44 = vpop.f32.mrb[46].mxu0  ;;  %v1115_v33 = vadd.f32 %v2994_v1, %v4010_v29  ;;  %v1120_v1 = vadd.f32 %v2997_v16, %v4010_v29 }
 0x1a8   :  { %v3093_v47 = vpop.f32.mrb[47].mxu1  ;;  %v3005_v0 = vpop.f32.mrb[47].mxu0 }
 0x1a9   :  { %v4082_v53 = vadd.f32 %v3091_v37, %v1096_v41  ;;  %v3094_v54 = vadd.f32 %v3093_v47, %v3092_v38  ;;  %v3006_v32 = vadd.f32 %v3005_v0, %v3004_v44 }
 0x1ab   :  { %v4084_v5 = vadd.f32 %v3094_v54, %v1099_v51 }
 0x1ad   :  { %v3095_v56 = vpop.f32.mrb[48].mxu1  ;;  %v3159_v58 = vpop.f32.mrb[48].mxu0 }
 0x1ae   :  { %v3096_v59 = vpop.f32.mrb[49].mxu1  ;;  %v3160_v60 = vpop.f32.mrb[49].mxu0 }
 0x1af   :  { %v3097_v63 = vadd.f32 %v3096_v59, %v3095_v56  ;;  %v3161_v10 = vadd.f32 %v3160_v60, %v3159_v58  ;;  %v3098_v3 = vpop.f32.mrb[50].mxu1  ;;  %v3162_v6 = vpop.f32.mrb[50].mxu0  ;;  %v1123_v60 = vadd.f32 %v3000_v26, %v4010_v29  ;;  %v1128_v26 = vadd.f32 %v3003_v40, %v4010_v29 }
 0x1b0   :  { %v3099_v8 = vpop.f32.mrb[51].mxu1  ;;  %v3163_v9 = vpop.f32.mrb[51].mxu0 }
 0x1b1   :  { %v4088_v17 = vadd.f32 %v3097_v63, %v1104_v7  ;;  %v4091_v11 = vadd.f32 %v3161_v10, %v4018_v27  ;;  %v3100_v13 = vadd.f32 %v3099_v8, %v3098_v3  ;;  %v3164_v50 = vadd.f32 %v3163_v9, %v3162_v6 }
 0x1b3   :  { %v4093_v35 = vadd.f32 %v3100_v13, %v1107_v14  ;;  %v4096_v23 = vadd.f32 %v3164_v50, %v4022_v55 }
 0x1b5   :  { %v3101_v20 = vpop.f32.mrb[52].mxu1  ;;  %v3165_v25 = vpop.f32.mrb[52].mxu0 }
 0x1b6   :  { %v3102_v41 = vpop.f32.mrb[53].mxu1  ;;  %v3166_v30 = vpop.f32.mrb[53].mxu0 }
 0x1b7   :  { %v3103_v34 = vadd.f32 %v3102_v41, %v3101_v20  ;;  %v3167_v36 = vadd.f32 %v3166_v30, %v3165_v25  ;;  %v3104_v51 = vpop.f32.mrb[54].mxu1  ;;  %v3168_v27 = vpop.f32.mrb[54].mxu0  ;;  %v1131_v30 = vadd.f32 %v3006_v32, %v4010_v29 }
 0x1b8   :  { %v3105_v37 = vpop.f32.mrb[55].mxu1  ;;  %v3169_v38 = vpop.f32.mrb[55].mxu0 }
 0x1b9   :  { %v4100_v44 = vadd.f32 %v3103_v34, %v1112_v43  ;;  %v4103_v47 = vadd.f32 %v3167_v36, %v4030_v45  ;;  %v3106_v55 = vadd.f32 %v3105_v37, %v3104_v51  ;;  %v3170_v0 = vadd.f32 %v3169_v38, %v3168_v27 }
 0x1bb   :  { %v4105_v57 = vadd.f32 %v3106_v55, %v1115_v33  ;;  %v4108_v54 = vadd.f32 %v3170_v0, %v4034_v19 }
 0x1bd   :  { %v3107_v7 = vpop.f32.mrb[56].mxu1  ;;  %v3171_v56 = vpop.f32.mrb[56].mxu0 }
 0x1be   :  { %v3108_v58 = vpop.f32.mrb[57].mxu1  ;;  %v3172_v59 = vpop.f32.mrb[57].mxu0 }
 0x1bf   :  { %v3109_v14 = vadd.f32 %v3108_v58, %v3107_v7  ;;  %v3173_v63 = vadd.f32 %v3172_v59, %v3171_v56  ;;  %v3110_v10 = vpop.f32.mrb[58].mxu1  ;;  %v3174_v45 = vpop.f32.mrb[58].mxu0  ;;  %v1136_v58 = vadd.f32 %v3975_v24, %v4010_v29 }
 0x1c0   :  { %v3111_v3 = vpop.f32.mrb[59].mxu1  ;;  %v3175_v6 = vpop.f32.mrb[59].mxu0 }
 0x1c1   :  { %v4112_v8 = vadd.f32 %v3109_v14, %v1120_v1  ;;  %v4115_v9 = vadd.f32 %v3173_v63, %v4042_v48  ;;  %v3112_v19 = vadd.f32 %v3111_v3, %v3110_v10  ;;  %v3176_v13 = vadd.f32 %v3175_v6, %v3174_v45 }
 0x1c3   :  { %v4117_v16 = vadd.f32 %v3112_v19, %v1123_v60  ;;  %v4120_v50 = vadd.f32 %v3176_v13, %v4046_v52 }
 0x1c5   :  { %v3113_v43 = vpop.f32.mrb[60].mxu1  ;;  %v3177_v20 = vpop.f32.mrb[60].mxu0 }
 0x1c6   :  { %v3114_v25 = vpop.f32.mrb[61].mxu1  ;;  %v3178_v41 = vpop.f32.mrb[61].mxu0 }
 0x1c7   :  { %v3115_v33 = vadd.f32 %v3114_v25, %v3113_v43  ;;  %v3179_v34 = vadd.f32 %v3178_v41, %v3177_v20  ;;  %v3116_v36 = vpop.f32.mrb[62].mxu1  ;;  %v3180_v48 = vpop.f32.mrb[62].mxu0 }
 0x1c8   :  { %v3117_v51 = vpop.f32.mrb[63].mxu1  ;;  %v3181_v27 = vpop.f32.mrb[63].mxu0 }
 0x1c9   :  { %v4124_v37 = vadd.f32 %v3115_v33, %v1128_v26  ;;  %v4127_v38 = vadd.f32 %v3179_v34, %v4052_v12  ;;  %v3118_v52 = vadd.f32 %v3117_v51, %v3116_v36  ;;  %v3182_v55 = vadd.f32 %v3181_v27, %v3180_v48 }
 0x1ca   :  { %v1139_v12 = vadd.f32 %v3979_v31, %v4010_v29  ;;  %v1144_v31 = vadd.f32 %v3983_v42, %v4010_v29 }
 0x1cb   :  { %v4129_v40 = vadd.f32 %v3118_v52, %v1131_v30  ;;  %v4132_v0 = vadd.f32 %v3182_v55, %v4054_v18 }
 0x1cd   :  { %v3119_v1 = vpop.f32.mrb[64].mxu1  ;;  %v3183_v32 = vpop.f32.mrb[64].mxu0 }
 0x1ce   :  { %v3120_v7 = vpop.f32.mrb[65].mxu1  ;;  %v3184_v56 = vpop.f32.mrb[65].mxu0 }
 0x1cf   :  { %v3121_v59 = vadd.f32 %v3120_v7, %v3119_v1  ;;  %v3185_v60 = vadd.f32 %v3184_v56, %v3183_v32  ;;  %v3122_v14 = vpop.f32.mrb[66].mxu1  ;;  %v3186_v63 = vpop.f32.mrb[66].mxu0 }
 0x1d0   :  { %v3123_v10 = vpop.f32.mrb[67].mxu1  ;;  %v3187_v45 = vpop.f32.mrb[67].mxu0 }
 0x1d1   :  { %v4138_v3 = vadd.f32 %v3121_v59, %v1136_v58  ;;  %v4141_v18 = vadd.f32 %v3185_v60, %v4060_v39  ;;  %v3124_v6 = vadd.f32 %v3123_v10, %v3122_v14  ;;  %v3188_v19 = vadd.f32 %v3187_v45, %v3186_v63 }
 0x1d2   :  { %v1147_v39 = vadd.f32 %v3987_v49, %v4010_v29  ;;  %v1152_v49 = vadd.f32 %v3991_v61, %v4010_v29 }
 0x1d3   :  { %v4143_v13 = vadd.f32 %v3124_v6, %v1139_v12  ;;  %v4146_v24 = vadd.f32 %v3188_v19, %v4062_v46 }
 0x1d5   :  { %v3125_v26 = vpop.f32.mrb[68].mxu1  ;;  %v3189_v43 = vpop.f32.mrb[68].mxu0 }
 0x1d6   :  { %v3126_v20 = vpop.f32.mrb[69].mxu1  ;;  %v3190_v25 = vpop.f32.mrb[69].mxu0 }
 0x1d7   :  { %v3127_v41 = vadd.f32 %v3126_v20, %v3125_v26  ;;  %v3191_v30 = vadd.f32 %v3190_v25, %v3189_v43  ;;  %v3128_v33 = vpop.f32.mrb[70].mxu1  ;;  %v3192_v34 = vpop.f32.mrb[70].mxu0 }
 0x1d8   :  { %v3129_v36 = vpop.f32.mrb[71].mxu1  ;;  %v3193_v48 = vpop.f32.mrb[71].mxu0 }
 0x1d9   :  { %v4152_v51 = vadd.f32 %v3127_v41, %v1144_v31  ;;  %v4155_v46 = vadd.f32 %v3191_v30, %v4068_v62  ;;  %v3130_v27 = vadd.f32 %v3129_v36, %v3128_v33  ;;  %v3194_v52 = vadd.f32 %v3193_v48, %v3192_v34 }
 0x1da   :  { %v1155_v62 = vadd.f32 %v3995_v4, %v4010_v29  ;;  %v1160_v4 = vadd.f32 %v3999_v15, %v4010_v29 }
 0x1db   :  { %v4157_v55 = vadd.f32 %v3130_v27, %v1147_v39  ;;  %v4160_v42 = vadd.f32 %v3194_v52, %v4070_v2 }
 0x1dd   :  { %v3131_v1 = vpop.f32.mrb[72].mxu1  ;;  %v3195_v32 = vpop.f32.mrb[72].mxu0 }
 0x1de   :  { %v3132_v7 = vpop.f32.mrb[73].mxu1  ;;  %v3196_v56 = vpop.f32.mrb[73].mxu0 }
 0x1df   :  { %v3133_v58 = vadd.f32 %v3132_v7, %v3131_v1  ;;  %v3197_v59 = vadd.f32 %v3196_v56, %v3195_v32  ;;  %v3134_v60 = vpop.f32.mrb[74].mxu1  ;;  %v3198_v14 = vpop.f32.mrb[74].mxu0 }
 0x1e0   :  { %v3135_v63 = vpop.f32.mrb[75].mxu1  ;;  %v3199_v12 = vpop.f32.mrb[75].mxu0 }
 0x1e1   :  { %v4166_v10 = vadd.f32 %v3133_v58, %v1152_v49  ;;  %v4169_v2 = vadd.f32 %v3197_v59, %v4076_v21  ;;  %v3136_v45 = vadd.f32 %v3135_v63, %v3134_v60  ;;  %v3200_v6 = vadd.f32 %v3199_v12, %v3198_v14  ;;  %v3680_v12 = vld [vmem:[#allocation8] sm:$0xff]  }
 0x1e2   :  { %v1163_v21 = vadd.f32 %v4003_v22, %v4010_v29  ;;  %3487 = vmatprep.subr.bf16.mxu1 %v3680_v12 }
 0x1e3   :  { %v4171_v19 = vadd.f32 %v3136_v45, %v1155_v62  ;;  %v4174_v61 = vadd.f32 %v3200_v6, %v4078_v28  ;;  %3488 = vmatpush3.bf16.msra.mxu1 %v3680_v12 }
 0x1e5   :  { %v3137_v26 = vpop.f32.mrb[76].mxu1  ;;  %v3201_v43 = vpop.f32.mrb[76].mxu0 }
 0x1e6   :  { %v3138_v20 = vpop.f32.mrb[77].mxu1  ;;  %v3202_v25 = vpop.f32.mrb[77].mxu0 }
 0x1e7   :  { %v3139_v31 = vadd.f32 %v3138_v20, %v3137_v26  ;;  %v3203_v41 = vadd.f32 %v3202_v25, %v3201_v43  ;;  %v3140_v30 = vpop.f32.mrb[78].mxu1  ;;  %v3204_v33 = vpop.f32.mrb[78].mxu0 }
 0x1e8   :  { %v3141_v34 = vpop.f32.mrb[79].mxu1  ;;  %v3205_v39 = vpop.f32.mrb[79].mxu0 }
 0x1e9   :  { %v4180_v36 = vadd.f32 %v3139_v31, %v1160_v4  ;;  %v4183_v28 = vadd.f32 %v3203_v41, %v4082_v53  ;;  %v3142_v48 = vadd.f32 %v3141_v34, %v3140_v30  ;;  %v3206_v27 = vadd.f32 %v3205_v39, %v3204_v33  ;;  %v3682_v31 = vld [vmem:[#allocation8 + $0x10] sm:$0xff]  }
 0x1eb   :  { %v4185_v52 = vadd.f32 %v3142_v48, %v1163_v21  ;;  %v4188_v15 = vadd.f32 %v3206_v27, %v4084_v5  ;;  %v3681_v5 = vld [vmem:[#allocation8 + $0x8] sm:$0xff]  }
 0x1ec   :  { %3489 = vmatprep.subr.bf16.mxu1 %v3681_v5 }
 0x1ed   :  { %v3207_v1 = vpop.f32.mrb[80].mxu0  ;;  %v3271_v32 = vpop.f32.mrb[80].mxu1  ;;  %3490 = vmatpush3.bf16.msra.mxu1 %v3681_v5 }
 0x1ee   :  { %v3208_v7 = vpop.f32.mrb[81].mxu0  ;;  %v3272_v56 = vpop.f32.mrb[81].mxu1  ;;  %3491 = vmatprep.subr.bf16.mxu1 %v3682_v31 }
 0x1ef   :  { %v3209_v49 = vadd.f32 %v3208_v7, %v3207_v1  ;;  %v3273_v22 = vadd.f32 %v3272_v56, %v3271_v32  ;;  %v3210_v29 = vpop.f32.mrb[82].mxu0  ;;  %v3274_v58 = vpop.f32.mrb[82].mxu1  ;;  %v3683_v1 = vld [vmem:[#allocation8 + $0x18] sm:$0xff]  }
 0x1f0   :  { %v3211_v59 = vpop.f32.mrb[83].mxu0  ;;  %v3275_v60 = vpop.f32.mrb[83].mxu1 }
 0x1f1   :  { %v4191_v53 = vadd.f32 %v3209_v49, %v4088_v17  ;;  %v1523_v14 = vadd.f32 %v3273_v22, %v4091_v11  ;;  %v3212_v62 = vadd.f32 %v3211_v59, %v3210_v29  ;;  %v3276_v63 = vadd.f32 %v3275_v60, %v3274_v58  ;;  %3492 = vmatpush3.bf16.msra.mxu1 %v3682_v31  ;;  %v3684_v59 = vld [vmem:[#allocation8 + $0x20] sm:$0xff]  }
 0x1f2   :  { %3493 = vmatprep.subr.bf16.mxu1 %v3683_v1 }
 0x1f3   :  { %v4195_v45 = vadd.f32 %v3212_v62, %v4093_v35  ;;  %v1526_v6 = vadd.f32 %v3276_v63, %v4096_v23  ;;  %v1649_v26 = vmax.f32 %v1523_v14, 0.0 }
 0x1f5   :  { %v1650_v43 = vmax.f32 %v1526_v6, 0.0  ;;  %v3213_v20 = vpop.f32.mrb[84].mxu0  ;;  %v3277_v25 = vpop.f32.mrb[84].mxu1  ;;  %3494 = vmatpush3.bf16.msra.mxu1 %v3683_v1 }
 0x1f6   :  { %v3214_v17 = vpop.f32.mrb[85].mxu0  ;;  %v3278_v4 = vpop.f32.mrb[85].mxu1  ;;  %3495 = vmatprep.subr.bf16.mxu1 %v3684_v59 }
 0x1f7   :  { %v3215_v11 = vadd.f32 %v3214_v17, %v3213_v20  ;;  %v3279_v41 = vadd.f32 %v3278_v4, %v3277_v25  ;;  %v3216_v30 = vpop.f32.mrb[86].mxu0  ;;  %v3280_v33 = vpop.f32.mrb[86].mxu1  ;;  %v1698_v21 = vpack.c.bf16 %v1650_v43, %v1649_v26  ;;  %v3685_v43 = vld [vmem:[#allocation8 + $0x28] sm:$0xff]  }
 0x1f8   :  { %v3217_v34 = vpop.f32.mrb[87].mxu0  ;;  %v3281_v35 = vpop.f32.mrb[87].mxu1 }
 0x1f9   :  { %v4199_v23 = vadd.f32 %v3215_v11, %v4100_v44  ;;  %v1531_v39 = vadd.f32 %v3279_v41, %v4103_v47  ;;  %v3218_v48 = vadd.f32 %v3217_v34, %v3216_v30  ;;  %v3282_v27 = vadd.f32 %v3281_v35, %v3280_v33  ;;  %3455 = vmatprep.mubr.bf16.mxu0 %v1698_v21 }
 0x1fa   :  { %3496 = vmatpush3.bf16.msra.mxu1 %v3684_v59 }
 0x1fb   :  { %v4203_v32 = vadd.f32 %v3218_v48, %v4105_v57  ;;  %v1534_v7 = vadd.f32 %v3282_v27, %v4108_v54  ;;  %v1651_v56 = vmax.f32 %v1531_v39, 0.0  ;;  %3497 = vmatprep.subr.bf16.mxu1 %v3685_v43 }
 0x1fd   :  { %v1652_v49 = vmax.f32 %v1534_v7, 0.0  ;;  %v3219_v22 = vpop.f32.mrb[88].mxu0  ;;  %v3283_v29 = vpop.f32.mrb[88].mxu1 }
 0x1fe   :  { %v3220_v44 = vpop.f32.mrb[89].mxu0  ;;  %v3284_v58 = vpop.f32.mrb[89].mxu1  ;;  %3498 = vmatpush3.bf16.msra.mxu1 %v3685_v43 }
 0x1ff   :  { %v1699_v47 = vpack.c.bf16 %v1652_v49, %v1651_v56  ;;  %v3221_v60 = vadd.f32 %v3220_v44, %v3219_v22  ;;  %v3285_v14 = vadd.f32 %v3284_v58, %v3283_v29  ;;  %v3222_v62 = vpop.f32.mrb[90].mxu0  ;;  %v3286_v63 = vpop.f32.mrb[90].mxu1 }
 0x200   :  { %v3223_v12 = vpop.f32.mrb[91].mxu0  ;;  %v3287_v5 = vpop.f32.mrb[91].mxu1 }
 0x201   :  { %v4207_v57 = vadd.f32 %v3221_v60, %v4112_v8  ;;  %v1539_v54 = vadd.f32 %v3285_v14, %v4115_v9  ;;  %v3224_v6 = vadd.f32 %v3223_v12, %v3222_v62  ;;  %v3288_v26 = vadd.f32 %v3287_v5, %v3286_v63  ;;  %3456 = vmatmul.mubr.bf16.vlgmr.msra.gmra.mrb[112].mxu0 %v1699_v47 }
 0x203   :  { %v4211_v20 = vadd.f32 %v3224_v6, %v4117_v16  ;;  %v1542_v25 = vadd.f32 %v3288_v26, %v4120_v50  ;;  %v1653_v17 = vmax.f32 %v1539_v54, 0.0 }
 0x205   :  { %v1654_v4 = vmax.f32 %v1542_v25, 0.0  ;;  %v3225_v31 = vpop.f32.mrb[92].mxu0  ;;  %v3289_v11 = vpop.f32.mrb[92].mxu1 }
 0x206   :  { %v3226_v8 = vpop.f32.mrb[93].mxu0  ;;  %v3290_v41 = vpop.f32.mrb[93].mxu1 }
 0x207   :  { %v3227_v30 = vadd.f32 %v3226_v8, %v3225_v31  ;;  %v3291_v9 = vadd.f32 %v3290_v41, %v3289_v11  ;;  %v3228_v33 = vpop.f32.mrb[94].mxu0  ;;  %v3292_v21 = vpop.f32.mrb[94].mxu1  ;;  %v1700_v34 = vpack.c.bf16 %v1654_v4, %v1653_v17 }
 0x208   :  { %v3229_v35 = vpop.f32.mrb[95].mxu0  ;;  %v3293_v39 = vpop.f32.mrb[95].mxu1 }
 0x209   :  { %v4215_v16 = vadd.f32 %v3227_v30, %v4124_v37  ;;  %v1547_v50 = vadd.f32 %v3291_v9, %v4127_v38  ;;  %v3230_v48 = vadd.f32 %v3229_v35, %v3228_v33  ;;  %v3294_v27 = vadd.f32 %v3293_v39, %v3292_v21  ;;  %3459 = vmatprep.mubr.bf16.mxu0 %v1700_v34 }
 0x20b   :  { %v4219_v1 = vadd.f32 %v3230_v48, %v4129_v40  ;;  %v1550_v7 = vadd.f32 %v3294_v27, %v4132_v0  ;;  %v1655_v56 = vmax.f32 %v1547_v50, 0.0 }
 0x20d   :  { %v1656_v49 = vmax.f32 %v1550_v7, 0.0  ;;  %v3231_v22 = vpop.f32.mrb[96].mxu0  ;;  %v3295_v29 = vpop.f32.mrb[96].mxu1 }
 0x20e   :  { %v3232_v44 = vpop.f32.mrb[97].mxu0  ;;  %v3296_v58 = vpop.f32.mrb[97].mxu1 }
 0x20f   :  { %v3233_v59 = vadd.f32 %v3232_v44, %v3231_v22  ;;  %v3297_v47 = vadd.f32 %v3296_v58, %v3295_v29  ;;  %v3234_v37 = vpop.f32.mrb[98].mxu0  ;;  %v3298_v60 = vpop.f32.mrb[98].mxu1  ;;  %v1701_v14 = vpack.c.bf16 %v1656_v49, %v1655_v56 }
 0x210   :  { %v3235_v38 = vpop.f32.mrb[99].mxu0  ;;  %v3299_v62 = vpop.f32.mrb[99].mxu1 }
 0x211   :  { %v4223_v63 = vadd.f32 %v3233_v59, %v4138_v3  ;;  %v1555_v40 = vadd.f32 %v3297_v47, %v4141_v18  ;;  %v3236_v12 = vadd.f32 %v3235_v38, %v3234_v37  ;;  %v3300_v0 = vadd.f32 %v3299_v62, %v3298_v60  ;;  %3460 = vmatmul.mubr.bf16.gmra.mrb[116].mxu0 %v1701_v14 }
 0x213   :  { %v4227_v5 = vadd.f32 %v3236_v12, %v4143_v13  ;;  %v1558_v54 = vadd.f32 %v3300_v0, %v4146_v24  ;;  %v1657_v6 = vmax.f32 %v1555_v40, 0.0 }
 0x215   :  { %v1658_v26 = vmax.f32 %v1558_v54, 0.0  ;;  %v3237_v43 = vpop.f32.mrb[100].mxu0  ;;  %v3301_v25 = vpop.f32.mrb[100].mxu1 }
 0x216   :  { %v3238_v17 = vpop.f32.mrb[101].mxu0  ;;  %v3302_v4 = vpop.f32.mrb[101].mxu1 }
 0x217   :  { %v3239_v31 = vadd.f32 %v3238_v17, %v3237_v43  ;;  %v3303_v11 = vadd.f32 %v3302_v4, %v3301_v25  ;;  %v3240_v3 = vpop.f32.mrb[102].mxu0  ;;  %v3304_v8 = vpop.f32.mrb[102].mxu1  ;;  %v1702_v41 = vpack.c.bf16 %v1658_v26, %v1657_v6 }
 0x218   :  { %v3241_v18 = vpop.f32.mrb[103].mxu0  ;;  %v3305_v30 = vpop.f32.mrb[103].mxu1 }
 0x219   :  { %v4231_v9 = vadd.f32 %v3239_v31, %v4152_v51  ;;  %v1563_v13 = vadd.f32 %v3303_v11, %v4155_v46  ;;  %v3242_v33 = vadd.f32 %v3241_v18, %v3240_v3  ;;  %v3306_v24 = vadd.f32 %v3305_v30, %v3304_v8  ;;  %3463 = vmatprep.mubr.bf16.mxu0 %v1702_v41 }
 0x21b   :  { %v4235_v21 = vadd.f32 %v3242_v33, %v4157_v55  ;;  %v1566_v34 = vadd.f32 %v3306_v24, %v4160_v42  ;;  %v1659_v35 = vmax.f32 %v1563_v13, 0.0 }
 0x21d   :  { %v1660_v39 = vmax.f32 %v1566_v34, 0.0  ;;  %v3243_v50 = vpop.f32.mrb[104].mxu0  ;;  %v3307_v48 = vpop.f32.mrb[104].mxu1 }
 0x21e   :  { %v3244_v27 = vpop.f32.mrb[105].mxu0  ;;  %v3308_v7 = vpop.f32.mrb[105].mxu1 }
 0x21f   :  { %v3245_v56 = vadd.f32 %v3244_v27, %v3243_v50  ;;  %v3309_v49 = vadd.f32 %v3308_v7, %v3307_v48  ;;  %v3246_v51 = vpop.f32.mrb[106].mxu0  ;;  %v3310_v22 = vpop.f32.mrb[106].mxu1  ;;  %v1703_v29 = vpack.c.bf16 %v1660_v39, %v1659_v35 }
 0x220   :  { %v3247_v46 = vpop.f32.mrb[107].mxu0  ;;  %v3311_v44 = vpop.f32.mrb[107].mxu1 }
 0x221   :  { %v4239_v58 = vadd.f32 %v3245_v56, %v4166_v10  ;;  %v1571_v55 = vadd.f32 %v3309_v49, %v4169_v2  ;;  %v3248_v59 = vadd.f32 %v3247_v46, %v3246_v51  ;;  %v3312_v42 = vadd.f32 %v3311_v44, %v3310_v22  ;;  %3464 = vmatmul.mubr.bf16.gmra.mrb[120].mxu0 %v1703_v29 }
 0x223   :  { %v4243_v47 = vadd.f32 %v3248_v59, %v4171_v19  ;;  %v1574_v37 = vadd.f32 %v3312_v42, %v4174_v61  ;;  %v1661_v60 = vmax.f32 %v1571_v55, 0.0 }
 0x225   :  { %v1662_v14 = vmax.f32 %v1574_v37, 0.0  ;;  %v3249_v38 = vpop.f32.mrb[108].mxu0  ;;  %v3313_v62 = vpop.f32.mrb[108].mxu1 }
 0x226   :  { %v3250_v40 = vpop.f32.mrb[109].mxu0  ;;  %v3314_v12 = vpop.f32.mrb[109].mxu1 }
 0x227   :  { %v3251_v0 = vadd.f32 %v3250_v40, %v3249_v38  ;;  %v3315_v54 = vadd.f32 %v3314_v12, %v3313_v62  ;;  %v3252_v10 = vpop.f32.mrb[110].mxu0  ;;  %v3316_v6 = vpop.f32.mrb[110].mxu1  ;;  %v1704_v26 = vpack.c.bf16 %v1662_v14, %v1661_v60 }
 0x228   :  { %v3253_v2 = vpop.f32.mrb[111].mxu0  ;;  %v3317_v43 = vpop.f32.mrb[111].mxu1 }
 0x229   :  { %v4247_v25 = vadd.f32 %v3251_v0, %v4180_v36  ;;  %v1579_v19 = vadd.f32 %v3315_v54, %v4183_v28  ;;  %v3254_v17 = vadd.f32 %v3253_v2, %v3252_v10  ;;  %v3318_v61 = vadd.f32 %v3317_v43, %v3316_v6  ;;  %3467 = vmatprep.mubr.bf16.mxu0 %v1704_v26 }
 0x22b   :  { %v4251_v4 = vadd.f32 %v3254_v17, %v4185_v52  ;;  %v1582_v31 = vadd.f32 %v3318_v61, %v4188_v15  ;;  %v1663_v11 = vmax.f32 %v1579_v19, 0.0 }
 0x22d   :  { %v1664_v3 = vmax.f32 %v1582_v31, 0.0  ;;  %v3319_v8 = vpop.f32.mrb[112].mxu1 }
 0x22e   :  { %v3320_v41 = vpop.f32.mrb[113].mxu1 }
 0x22f   :  { %v3321_v18 = vadd.f32 %v3320_v41, %v3319_v8  ;;  %v3322_v30 = vpop.f32.mrb[114].mxu1  ;;  %v1705_v13 = vpack.c.bf16 %v1664_v3, %v1663_v11  ;;  %v3686_v41 = vld [vmem:[#allocation8 + $0x30] sm:$0xff]  }
 0x230   :  { %v3323_v33 = vpop.f32.mrb[115].mxu1  ;;  %3499 = vmatprep.subr.bf16.mxu1 %v3686_v41 }
 0x231   :  { %v1587_v36 = vadd.f32 %v3321_v18, %v4191_v53  ;;  %v3324_v24 = vadd.f32 %v3323_v33, %v3322_v30  ;;  %3468 = vmatmul.mubr.bf16.gmra.mrb[124].mxu0 %v1705_v13  ;;  %3500 = vmatpush3.bf16.msra.mxu1 %v3686_v41 }
 0x233   :  { %v1590_v28 = vadd.f32 %v3324_v24, %v4195_v45  ;;  %v1665_v34 = vmax.f32 %v1587_v36, 0.0 }
 0x235   :  { %v1666_v35 = vmax.f32 %v1590_v28, 0.0  ;;  %v3325_v52 = vpop.f32.mrb[116].mxu1 }
 0x236   :  { %v3326_v39 = vpop.f32.mrb[117].mxu1 }
 0x237   :  { %v3327_v50 = vadd.f32 %v3326_v39, %v3325_v52  ;;  %v3328_v15 = vpop.f32.mrb[118].mxu1  ;;  %v1706_v48 = vpack.c.bf16 %v1666_v35, %v1665_v34 }
 0x238   :  { %v3329_v27 = vpop.f32.mrb[119].mxu1 }
 0x239   :  { %v1595_v7 = vadd.f32 %v3327_v50, %v4199_v23  ;;  %v3330_v56 = vadd.f32 %v3329_v27, %v3328_v15  ;;  %3471 = vmatprep.mubr.bf16.mxu0 %v1706_v48 }
 0x23b   :  { %v1598_v49 = vadd.f32 %v3330_v56, %v4203_v32  ;;  %v1667_v51 = vmax.f32 %v1595_v7, 0.0 }
 0x23d   :  { %v1668_v53 = vmax.f32 %v1598_v49, 0.0  ;;  %v3331_v22 = vpop.f32.mrb[120].mxu1 }
 0x23e   :  { %v3332_v29 = vpop.f32.mrb[121].mxu1 }
 0x23f   :  { %v3333_v46 = vadd.f32 %v3332_v29, %v3331_v22  ;;  %v3334_v45 = vpop.f32.mrb[122].mxu1  ;;  %v1707_v44 = vpack.c.bf16 %v1668_v53, %v1667_v51 }
 0x240   :  { %v3335_v55 = vpop.f32.mrb[123].mxu1 }
 0x241   :  { %v1603_v59 = vadd.f32 %v3333_v46, %v4207_v57  ;;  %v3336_v42 = vadd.f32 %v3335_v55, %v3334_v45  ;;  %3472 = vmatmul.mubr.bf16.gmra.mrb[128].mxu0 %v1707_v44 }
 0x243   :  { %v1606_v37 = vadd.f32 %v3336_v42, %v4211_v20  ;;  %v1669_v60 = vmax.f32 %v1603_v59, 0.0 }
 0x245   :  { %v1670_v23 = vmax.f32 %v1606_v37, 0.0  ;;  %v3337_v14 = vpop.f32.mrb[124].mxu1  ;;  %v3688_v37 = vld [vmem:[#allocation10] sm:$0xff]  }
 0x246   :  { %v3338_v38 = vpop.f32.mrb[125].mxu1  ;;  %3535 = vmatprep.subr.bf16.mxu0 %v3688_v37 }
 0x247   :  { %v3339_v62 = vadd.f32 %v3338_v38, %v3337_v14  ;;  %v3340_v32 = vpop.f32.mrb[126].mxu1  ;;  %v1708_v40 = vpack.c.bf16 %v1670_v23, %v1669_v60  ;;  %v4273_v60 = vld [vmem:[%s4400_s4] ss:$0 sm:$0xff]  ;;  %3536 = vmatpush3.bf16.msra.mxu0 %v3688_v37  ;;  %v3690_v23 = vld [vmem:[#allocation10 + $0x10] sm:$0xff]  }
 0x248   :  { %v3341_v12 = vpop.f32.mrb[127].mxu1 }
 0x249   :  { %v1611_v0 = vadd.f32 %v3339_v62, %v4215_v16  ;;  %v3342_v54 = vadd.f32 %v3341_v12, %v3340_v32  ;;  %3475 = vmatprep.mubr.bf16.mxu0 %v1708_v40  ;;  %v3691_v12 = vld [vmem:[#allocation10 + $0x18] sm:$0xff]  }
 0x24b   :  { %v1614_v10 = vadd.f32 %v3342_v54, %v4219_v1  ;;  %v1671_v6 = vmax.f32 %v1611_v0, 0.0 }
 0x24d   :  { %v1672_v57 = vmax.f32 %v1614_v10, 0.0  ;;  %v3343_v26 = vpop.f32.mrb[128].mxu1 }
 0x24e   :  { %v3344_v2 = vpop.f32.mrb[129].mxu1 }
 0x24f   :  { %v3345_v43 = vadd.f32 %v3344_v2, %v3343_v26  ;;  %v3346_v20 = vpop.f32.mrb[130].mxu1  ;;  %v1709_v19 = vpack.c.bf16 %v1672_v57, %v1671_v6  ;;  %v3692_v2 = vld [vmem:[#allocation10 + $0x20] sm:$0xff]  }
 0x250   :  { %v3347_v17 = vpop.f32.mrb[131].mxu1 }
 0x251   :  { %v1619_v61 = vadd.f32 %v3345_v43, %v4223_v63  ;;  %v3348_v31 = vadd.f32 %v3347_v17, %v3346_v20  ;;  %3476 = vmatmul.mubr.bf16.gmra.mrb[132].mxu0 %v1709_v19  ;;  %v3687_v63 = vld [vmem:[#allocation8 + $0x38] sm:$0xff]   ;;  %v3693_v20 = vld [vmem:[#allocation10 + $0x28] sm:$0xff]  }
 0x252   :  { %3501 = vmatprep.subr.bf16.mxu1 %v3687_v63 }
 0x253   :  { %v1622_v11 = vadd.f32 %v3348_v31, %v4227_v5  ;;  %v1673_v3 = vmax.f32 %v1619_v61, 0.0  ;;  %3502 = vmatpush3.bf16.msra.mxu1 %v3687_v63 }
 0x255   :  { %v1674_v16 = vmax.f32 %v1622_v11, 0.0  ;;  %v3349_v8 = vpop.f32.mrb[132].mxu1 }
 0x256   :  { %v3350_v18 = vpop.f32.mrb[133].mxu1 }
 0x257   :  { %v3351_v1 = vadd.f32 %v3350_v18, %v3349_v8  ;;  %v3352_v30 = vpop.f32.mrb[134].mxu1  ;;  %v1710_v13 = vpack.c.bf16 %v1674_v16, %v1673_v3 }
 0x258   :  { %v3353_v33 = vpop.f32.mrb[135].mxu1 }
 0x259   :  { %v1627_v36 = vadd.f32 %v3351_v1, %v4231_v9  ;;  %v3354_v24 = vadd.f32 %v3353_v33, %v3352_v30  ;;  %3479 = vmatprep.mubr.bf16.mxu0 %v1710_v13 }
 0x25b   :  { %v1630_v28 = vadd.f32 %v3354_v24, %v4235_v21  ;;  %v1675_v5 = vmax.f32 %v1627_v36, 0.0 }
 0x25d   :  { %v1676_v34 = vmax.f32 %v1630_v28, 0.0  ;;  %v3355_v35 = vpop.f32.mrb[136].mxu1 }
 0x25e   :  { %v3356_v52 = vpop.f32.mrb[137].mxu1 }
 0x25f   :  { %v3357_v39 = vadd.f32 %v3356_v52, %v3355_v35  ;;  %v3358_v50 = vpop.f32.mrb[138].mxu1  ;;  %v1711_v15 = vpack.c.bf16 %v1676_v34, %v1675_v5 }
 0x260   :  { %v3359_v48 = vpop.f32.mrb[139].mxu1 }
 0x261   :  { %v1635_v27 = vadd.f32 %v3357_v39, %v4239_v58  ;;  %v3360_v7 = vadd.f32 %v3359_v48, %v3358_v50  ;;  %3480 = vmatmul.mubr.bf16.gmra.mrb[136].mxu0 %v1711_v15 }
 0x263   :  { %v1638_v9 = vadd.f32 %v3360_v7, %v4243_v47  ;;  %v1677_v56 = vmax.f32 %v1635_v27, 0.0  ;;  %v3689_v47 = vld [vmem:[#allocation10 + $0x8] sm:$0xff]  }
 0x264   :  { %3537 = vmatprep.subr.bf16.mxu0 %v3689_v47 }
 0x265   :  { %v1678_v49 = vmax.f32 %v1638_v9, 0.0  ;;  %v3361_v51 = vpop.f32.mrb[140].mxu1  ;;  %3538 = vmatpush3.bf16.msra.mxu0 %v3689_v47 }
 0x266   :  { %v3362_v21 = vpop.f32.mrb[141].mxu1  ;;  %3539 = vmatprep.subr.bf16.mxu0 %v3690_v23 }
 0x267   :  { %v3363_v53 = vadd.f32 %v3362_v21, %v3361_v51  ;;  %v3364_v22 = vpop.f32.mrb[142].mxu1  ;;  %v1712_v29 = vpack.c.bf16 %v1678_v49, %v1677_v56 }
 0x268   :  { %v3365_v46 = vpop.f32.mrb[143].mxu1 }
 0x269   :  { %v1643_v45 = vadd.f32 %v3363_v53, %v4247_v25  ;;  %v3366_v44 = vadd.f32 %v3365_v46, %v3364_v22  ;;  %3483 = vmatprep.mubr.bf16.mxu0 %v1712_v29  ;;  %3540 = vmatpush3.bf16.msra.mxu0 %v3690_v23 }
 0x26a   :  { %3541 = vmatprep.subr.bf16.mxu0 %v3691_v12 }
 0x26b   :  { %v1646_v55 = vadd.f32 %v3366_v44, %v4251_v4  ;;  %v1679_v59 = vmax.f32 %v1643_v45, 0.0 }
 0x26d   :  { %v1680_v58 = vmax.f32 %v1646_v55, 0.0  ;;  %3542 = vmatpush3.bf16.msra.mxu0 %v3691_v12 }
 0x26e   :  { %3543 = vmatprep.subr.bf16.mxu0 %v3692_v2 }
 0x26f   :  { %v1713_v42 = vpack.c.bf16 %v1680_v58, %v1679_v59 }
 0x271   :  { %3484 = vmatmul.mubr.bf16.gmra.mrb[140].mxu0 %v1713_v42 }
 0x272   :  { %3544 = vmatpush3.bf16.msra.mxu0 %v3692_v2 }
 0x273   :  { %3545 = vmatprep.subr.bf16.mxu0 %v3693_v20 }
 0x276   :  { %3546 = vmatpush3.bf16.msra.mxu0 %v3693_v20 }
 0x2d4   :  { %v3457_v25 = vpop.f32.mrb[112].mxu0 }
 0x2d5   :  { %v1811_v14 = vadd.f32 %v3457_v25, %v4273_v60  ;;  %v1802_v38 = vpop.f32.mrb[113].mxu0 }
 0x2d6   :  { %v1803_v4 = vadd.f32 %v4273_v60, %v1802_v38  ;;  %v3458_v62 = vpop.f32.mrb[114].mxu0 }
 0x2d7   :  { %v1814_v32 = vadd.f32 %v3458_v62, %v4273_v60  ;;  %v1805_v40 = vpop.f32.mrb[115].mxu0  ;;  %v1931_v54 = vmax.f32 %v1811_v14, 0.0 }
 0x2d8   :  { %v1806_v0 = vadd.f32 %v4273_v60, %v1805_v40  ;;  %v1929_v6 = vmax.f32 %v1803_v4, 0.0 }
 0x2d9   :  { %v1932_v10 = vmax.f32 %v1814_v32, 0.0 }
 0x2da   :  { %v1930_v57 = vmax.f32 %v1806_v0, 0.0 }
 0x2db   :  { %v1979_v26 = vpack.c.bf16 %v1932_v10, %v1931_v54 }
 0x2dc   :  { %v1978_v43 = vpack.c.bf16 %v1930_v57, %v1929_v6 }
 0x2de   :  { %3503 = vmatprep.mubr.bf16.mxu1 %v1978_v43 }
 0x2df   :  { %3504 = vmatmul.mubr.bf16.vlgmr.msra.gmra.mrb[144].mxu1 %v1979_v26 }
 0x2e4   :  { %v3461_v19 = vpop.f32.mrb[116].mxu0 }
 0x2e5   :  { %v1827_v17 = vadd.f32 %v3461_v19, %v4273_v60  ;;  %v1818_v61 = vpop.f32.mrb[117].mxu0 }
 0x2e6   :  { %v1819_v31 = vadd.f32 %v4273_v60, %v1818_v61  ;;  %v3462_v11 = vpop.f32.mrb[118].mxu0 }
 0x2e7   :  { %v1830_v3 = vadd.f32 %v3462_v11, %v4273_v60  ;;  %v1821_v16 = vpop.f32.mrb[119].mxu0  ;;  %v1935_v41 = vmax.f32 %v1827_v17, 0.0 }
 0x2e8   :  { %v1822_v8 = vadd.f32 %v4273_v60, %v1821_v16  ;;  %v1933_v1 = vmax.f32 %v1819_v31, 0.0 }
 0x2e9   :  { %v1936_v18 = vmax.f32 %v1830_v3, 0.0 }
 0x2ea   :  { %v1934_v30 = vmax.f32 %v1822_v8, 0.0  ;;  %v3694_v8 = vld [vmem:[#allocation10 + $0x30] sm:$0xff]  }
 0x2eb   :  { %v1981_v13 = vpack.c.bf16 %v1936_v18, %v1935_v41  ;;  %3547 = vmatprep.subr.bf16.mxu0 %v3694_v8 }
 0x2ec   :  { %v1980_v33 = vpack.c.bf16 %v1934_v30, %v1933_v1  ;;  %3548 = vmatpush3.bf16.msra.mxu0 %v3694_v8 }
 0x2ee   :  { %3507 = vmatprep.mubr.bf16.mxu1 %v1980_v33 }
 0x2ef   :  { %3508 = vmatmul.mubr.bf16.gmra.mrb[148].mxu1 %v1981_v13 }
 0x2f4   :  { %v3465_v36 = vpop.f32.mrb[120].mxu0 }
 0x2f5   :  { %v1843_v24 = vadd.f32 %v3465_v36, %v4273_v60  ;;  %v1834_v63 = vpop.f32.mrb[121].mxu0 }
 0x2f6   :  { %v1835_v28 = vadd.f32 %v4273_v60, %v1834_v63  ;;  %v3466_v5 = vpop.f32.mrb[122].mxu0 }
 0x2f7   :  { %v1846_v34 = vadd.f32 %v3466_v5, %v4273_v60  ;;  %v1837_v35 = vpop.f32.mrb[123].mxu0  ;;  %v1939_v39 = vmax.f32 %v1843_v24, 0.0  ;;  %v3695_v24 = vld [vmem:[#allocation10 + $0x38] sm:$0xff]  }
 0x2f8   :  { %v1838_v52 = vadd.f32 %v4273_v60, %v1837_v35  ;;  %v1937_v15 = vmax.f32 %v1835_v28, 0.0  ;;  %3549 = vmatprep.subr.bf16.mxu0 %v3695_v24 }
 0x2f9   :  { %v1940_v50 = vmax.f32 %v1846_v34, 0.0  ;;  %3550 = vmatpush3.bf16.msra.mxu0 %v3695_v24 }
 0x2fa   :  { %v1938_v48 = vmax.f32 %v1838_v52, 0.0 }
 0x2fb   :  { %v1983_v27 = vpack.c.bf16 %v1940_v50, %v1939_v39 }
 0x2fc   :  { %v1982_v7 = vpack.c.bf16 %v1938_v48, %v1937_v15 }
 0x2fe   :  { %3511 = vmatprep.mubr.bf16.mxu1 %v1982_v7 }
 0x2ff   :  { %3512 = vmatmul.mubr.bf16.gmra.mrb[152].mxu1 %v1983_v27 }
 0x304   :  { %v3469_v9 = vpop.f32.mrb[124].mxu0 }
 0x305   :  { %v1859_v56 = vadd.f32 %v3469_v9, %v4273_v60  ;;  %v1850_v49 = vpop.f32.mrb[125].mxu0 }
 0x306   :  { %v1851_v51 = vadd.f32 %v4273_v60, %v1850_v49  ;;  %v3470_v21 = vpop.f32.mrb[126].mxu0 }
 0x307   :  { %v1862_v53 = vadd.f32 %v3470_v21, %v4273_v60  ;;  %v1853_v22 = vpop.f32.mrb[127].mxu0  ;;  %v1943_v46 = vmax.f32 %v1859_v56, 0.0 }
 0x308   :  { %v1854_v29 = vadd.f32 %v4273_v60, %v1853_v22  ;;  %v1941_v44 = vmax.f32 %v1851_v51, 0.0 }
 0x309   :  { %v1944_v45 = vmax.f32 %v1862_v53, 0.0 }
 0x30a   :  { %v1942_v55 = vmax.f32 %v1854_v29, 0.0 }
 0x30b   :  { %v1985_v59 = vpack.c.bf16 %v1944_v45, %v1943_v46  ;;  %v4310_v45 = vld [vmem:[%s4402_s6] ss:$0 sm:$0xff] }
 0x30c   :  { %v1984_v58 = vpack.c.bf16 %v1942_v55, %v1941_v44 }
 0x30e   :  { %3515 = vmatprep.mubr.bf16.mxu1 %v1984_v58 }
 0x30f   :  { %3516 = vmatmul.mubr.bf16.gmra.mrb[156].mxu1 %v1985_v59 }
 0x314   :  { %v3473_v42 = vpop.f32.mrb[128].mxu0 }
 0x315   :  { %v1875_v37 = vadd.f32 %v3473_v42, %v4273_v60  ;;  %v1866_v47 = vpop.f32.mrb[129].mxu0 }
 0x316   :  { %v1867_v23 = vadd.f32 %v4273_v60, %v1866_v47  ;;  %v3474_v25 = vpop.f32.mrb[130].mxu0 }
 0x317   :  { %v1878_v14 = vadd.f32 %v3474_v25, %v4273_v60  ;;  %v1869_v38 = vpop.f32.mrb[131].mxu0  ;;  %v1947_v62 = vmax.f32 %v1875_v37, 0.0 }
 0x318   :  { %v1870_v4 = vadd.f32 %v4273_v60, %v1869_v38  ;;  %v1945_v40 = vmax.f32 %v1867_v23, 0.0 }
 0x319   :  { %v1948_v32 = vmax.f32 %v1878_v14, 0.0 }
 0x31a   :  { %v1946_v12 = vmax.f32 %v1870_v4, 0.0 }
 0x31b   :  { %v1987_v0 = vpack.c.bf16 %v1948_v32, %v1947_v62 }
 0x31c   :  { %v1986_v54 = vpack.c.bf16 %v1946_v12, %v1945_v40 }
 0x31e   :  { %3519 = vmatprep.mubr.bf16.mxu1 %v1986_v54 }
 0x31f   :  { %3520 = vmatmul.mubr.bf16.gmra.mrb[160].mxu1 %v1987_v0 }
 0x324   :  { %v3477_v10 = vpop.f32.mrb[132].mxu0 }
 0x325   :  { %v1891_v6 = vadd.f32 %v3477_v10, %v4273_v60  ;;  %v1882_v57 = vpop.f32.mrb[133].mxu0 }
 0x326   :  { %v1883_v26 = vadd.f32 %v4273_v60, %v1882_v57  ;;  %v3478_v2 = vpop.f32.mrb[134].mxu0 }
 0x327   :  { %v1894_v43 = vadd.f32 %v3478_v2, %v4273_v60  ;;  %v1885_v20 = vpop.f32.mrb[135].mxu0  ;;  %v1951_v17 = vmax.f32 %v1891_v6, 0.0 }
 0x328   :  { %v1886_v19 = vadd.f32 %v4273_v60, %v1885_v20  ;;  %v1949_v31 = vmax.f32 %v1883_v26, 0.0 }
 0x329   :  { %v1952_v61 = vmax.f32 %v1894_v43, 0.0 }
 0x32a   :  { %v1950_v11 = vmax.f32 %v1886_v19, 0.0 }
 0x32b   :  { %v1989_v3 = vpack.c.bf16 %v1952_v61, %v1951_v17 }
 0x32c   :  { %v1988_v16 = vpack.c.bf16 %v1950_v11, %v1949_v31 }
 0x32e   :  { %3523 = vmatprep.mubr.bf16.mxu1 %v1988_v16 }
 0x32f   :  { %3524 = vmatmul.mubr.bf16.gmra.mrb[164].mxu1 %v1989_v3 }
 0x334   :  { %v3481_v41 = vpop.f32.mrb[136].mxu0 }
 0x335   :  { %v1907_v18 = vadd.f32 %v3481_v41, %v4273_v60  ;;  %v1898_v1 = vpop.f32.mrb[137].mxu0 }
 0x336   :  { %v1899_v30 = vadd.f32 %v4273_v60, %v1898_v1  ;;  %v3482_v13 = vpop.f32.mrb[138].mxu0 }
 0x337   :  { %v1910_v33 = vadd.f32 %v3482_v13, %v4273_v60  ;;  %v1901_v36 = vpop.f32.mrb[139].mxu0  ;;  %v1955_v28 = vmax.f32 %v1907_v18, 0.0 }
 0x338   :  { %v1902_v63 = vadd.f32 %v4273_v60, %v1901_v36  ;;  %v1953_v34 = vmax.f32 %v1899_v30, 0.0 }
 0x339   :  { %v1956_v5 = vmax.f32 %v1910_v33, 0.0 }
 0x33a   :  { %v1954_v35 = vmax.f32 %v1902_v63, 0.0 }
 0x33b   :  { %v1991_v52 = vpack.c.bf16 %v1956_v5, %v1955_v28 }
 0x33c   :  { %v1990_v39 = vpack.c.bf16 %v1954_v35, %v1953_v34 }
 0x33e   :  { %3527 = vmatprep.mubr.bf16.mxu1 %v1990_v39 }
 0x33f   :  { %3528 = vmatmul.mubr.bf16.gmra.mrb[168].mxu1 %v1991_v52 }
 0x344   :  { %v3485_v50 = vpop.f32.mrb[140].mxu0 }
 0x345   :  { %v1923_v15 = vadd.f32 %v3485_v50, %v4273_v60  ;;  %v1914_v48 = vpop.f32.mrb[141].mxu0 }
 0x346   :  { %v1915_v27 = vadd.f32 %v4273_v60, %v1914_v48  ;;  %v3486_v7 = vpop.f32.mrb[142].mxu0 }
 0x347   :  { %v1926_v9 = vadd.f32 %v3486_v7, %v4273_v60  ;;  %v1917_v56 = vpop.f32.mrb[143].mxu0  ;;  %v1959_v51 = vmax.f32 %v1923_v15, 0.0 }
 0x348   :  { %v1918_v49 = vadd.f32 %v4273_v60, %v1917_v56  ;;  %v1957_v53 = vmax.f32 %v1915_v27, 0.0 }
 0x349   :  { %v1960_v21 = vmax.f32 %v1926_v9, 0.0 }
 0x34a   :  { %v1958_v22 = vmax.f32 %v1918_v49, 0.0 }
 0x34b   :  { %v1993_v29 = vpack.c.bf16 %v1960_v21, %v1959_v51 }
 0x34c   :  { %v1992_v46 = vpack.c.bf16 %v1958_v22, %v1957_v53 }
 0x34e   :  { %3531 = vmatprep.mubr.bf16.mxu1 %v1992_v46 }
 0x34f   :  { %3532 = vmatmul.mubr.bf16.gmra.mrb[172].mxu1 %v1993_v29 }
 0x3b2   :  { %v3505_v44 = vpop.f32.mrb[144].mxu1 }
 0x3b3   :  { %v2091_v55 = vadd.f32 %v3505_v44, %v4310_v45  ;;  %v2082_v59 = vpop.f32.mrb[145].mxu1 }
 0x3b4   :  { %v2083_v58 = vadd.f32 %v4310_v45, %v2082_v59  ;;  %v3506_v60 = vpop.f32.mrb[146].mxu1 }
 0x3b5   :  { %v2094_v42 = vadd.f32 %v3506_v60, %v4310_v45  ;;  %v2085_v37 = vpop.f32.mrb[147].mxu1  ;;  %v2211_v23 = vmax.f32 %v2091_v55, 0.0 }
 0x3b6   :  { %v2086_v47 = vadd.f32 %v4310_v45, %v2085_v37  ;;  %v2209_v14 = vmax.f32 %v2083_v58, 0.0 }
 0x3b7   :  { %v2212_v25 = vmax.f32 %v2094_v42, 0.0 }
 0x3b8   :  { %v2210_v38 = vmax.f32 %v2086_v47, 0.0 }
 0x3b9   :  { %v2259_v4 = vpack.c.bf16 %v2212_v25, %v2211_v23 }
 0x3ba   :  { %v2258_v62 = vpack.c.bf16 %v2210_v38, %v2209_v14 }
 0x3bc   :  { %3551 = vmatprep.mubr.bf16.mxu0 %v2258_v62 }
 0x3bd   :  { %3552 = vmatmul.mubr.bf16.vlgmr.msra.gmra.mrb[144].mxu0 %v2259_v4 }
 0x3c2   :  { %v3509_v32 = vpop.f32.mrb[148].mxu1 }
 0x3c3   :  { %v2107_v40 = vadd.f32 %v3509_v32, %v4310_v45  ;;  %v2098_v12 = vpop.f32.mrb[149].mxu1 }
 0x3c4   :  { %v2099_v0 = vadd.f32 %v4310_v45, %v2098_v12  ;;  %v3510_v54 = vpop.f32.mrb[150].mxu1 }
 0x3c5   :  { %v2110_v10 = vadd.f32 %v3510_v54, %v4310_v45  ;;  %v2101_v6 = vpop.f32.mrb[151].mxu1  ;;  %v2215_v26 = vmax.f32 %v2107_v40, 0.0 }
 0x3c6   :  { %v2102_v57 = vadd.f32 %v4310_v45, %v2101_v6  ;;  %v2213_v43 = vmax.f32 %v2099_v0, 0.0 }
 0x3c7   :  { %v2216_v2 = vmax.f32 %v2110_v10, 0.0 }
 0x3c8   :  { %v2214_v20 = vmax.f32 %v2102_v57, 0.0 }
 0x3c9   :  { %v2261_v19 = vpack.c.bf16 %v2216_v2, %v2215_v26 }
 0x3ca   :  { %v2260_v17 = vpack.c.bf16 %v2214_v20, %v2213_v43 }
 0x3cc   :  { %3555 = vmatprep.mubr.bf16.mxu0 %v2260_v17 }
 0x3cd   :  { %3556 = vmatmul.mubr.bf16.gmra.mrb[148].mxu0 %v2261_v19 }
 0x3d2   :  { %v3513_v61 = vpop.f32.mrb[152].mxu1 }
 0x3d3   :  { %v2123_v31 = vadd.f32 %v3513_v61, %v4310_v45  ;;  %v2114_v11 = vpop.f32.mrb[153].mxu1 }
 0x3d4   :  { %v2115_v3 = vadd.f32 %v4310_v45, %v2114_v11  ;;  %v3514_v16 = vpop.f32.mrb[154].mxu1 }
 0x3d5   :  { %v2126_v8 = vadd.f32 %v3514_v16, %v4310_v45  ;;  %v2117_v41 = vpop.f32.mrb[155].mxu1  ;;  %v2219_v1 = vmax.f32 %v2123_v31, 0.0 }
 0x3d6   :  { %v2118_v18 = vadd.f32 %v4310_v45, %v2117_v41  ;;  %v2217_v13 = vmax.f32 %v2115_v3, 0.0 }
 0x3d7   :  { %v2220_v30 = vmax.f32 %v2126_v8, 0.0 }
 0x3d8   :  { %v2218_v33 = vmax.f32 %v2118_v18, 0.0 }
 0x3d9   :  { %v2263_v36 = vpack.c.bf16 %v2220_v30, %v2219_v1 }
 0x3da   :  { %v2262_v24 = vpack.c.bf16 %v2218_v33, %v2217_v13 }
 0x3dc   :  { %3559 = vmatprep.mubr.bf16.mxu0 %v2262_v24 }
 0x3dd   :  { %3560 = vmatmul.mubr.bf16.gmra.mrb[152].mxu0 %v2263_v36 }
 0x3e2   :  { %v3517_v63 = vpop.f32.mrb[156].mxu1 }
 0x3e3   :  { %v2139_v28 = vadd.f32 %v3517_v63, %v4310_v45  ;;  %v2130_v5 = vpop.f32.mrb[157].mxu1 }
 0x3e4   :  { %v2131_v34 = vadd.f32 %v4310_v45, %v2130_v5  ;;  %v3518_v35 = vpop.f32.mrb[158].mxu1 }
 0x3e5   :  { %v2142_v52 = vadd.f32 %v3518_v35, %v4310_v45  ;;  %v2133_v39 = vpop.f32.mrb[159].mxu1  ;;  %v2223_v15 = vmax.f32 %v2139_v28, 0.0 }
 0x3e6   :  { %v2134_v50 = vadd.f32 %v4310_v45, %v2133_v39  ;;  %v2221_v27 = vmax.f32 %v2131_v34, 0.0 }
 0x3e7   :  { %v2224_v48 = vmax.f32 %v2142_v52, 0.0 }
 0x3e8   :  { %v2222_v7 = vmax.f32 %v2134_v50, 0.0 }
 0x3e9   :  { %v2265_v9 = vpack.c.bf16 %v2224_v48, %v2223_v15  ;;  %v4347_v15 = vld [vmem:[%s4404_s8] ss:$0 sm:$0xff]  ;;  %s3844_s8 = smov [#allocation11]  }
 0x3ea   :  { %v2264_v56 = vpack.c.bf16 %v2222_v7, %v2221_v27  ;;  %s2654_s13 = sshll.u32 %s3844_s8, 4  ;;  %s2655_s13 = int_to_ptr.vmem [resolvable:$true] %s2654_s13 }
 0x3eb   :  { %s3806_s1 = scalar_lea.vmem %s2655_s13, 2048  ;;  %p3811_p13 = scmp.lt.s32.totalorder %s2655_s13, %s2655_s13 }
 0x3ec   :  { %3563 = vmatprep.mubr.bf16.mxu0 %v2264_v56  ;;  %p3807_p12 = scmp.ne.s32.totalorder %s2655_s13, %s3806_s1  ;;  %p3812_p0 = scmp.lt.s32.totalorder %s3806_s1, %s3806_s1 }
 0x3ed   :  { %3564 = vmatmul.mubr.bf16.gmra.mrb[156].mxu0 %v2265_v9 }
 0x3ee   :  { %p3813_p1 = por %p3812_p0, %p3811_p13 }
 0x3f0   :  { %p3814_p2 = pnand %p3813_p1, %p3807_p12 }
 0x3f2   :  { %v3521_v49 = vpop.f32.mrb[160].mxu1 }
 0x3f3   :  { %v2155_v51 = vadd.f32 %v3521_v49, %v4310_v45  ;;  %v2146_v21 = vpop.f32.mrb[161].mxu1 }
 0x3f4   :  { %v2147_v53 = vadd.f32 %v4310_v45, %v2146_v21  ;;  %v3522_v22 = vpop.f32.mrb[162].mxu1 }
 0x3f5   :  { %v2158_v29 = vadd.f32 %v3522_v22, %v4310_v45  ;;  %v2149_v46 = vpop.f32.mrb[163].mxu1  ;;  %v2227_v55 = vmax.f32 %v2155_v51, 0.0 }
 0x3f6   :  { %v2150_v44 = vadd.f32 %v4310_v45, %v2149_v46  ;;  %v2225_v58 = vmax.f32 %v2147_v53, 0.0 }
 0x3f7   :  { %v2228_v59 = vmax.f32 %v2158_v29, 0.0 }
 0x3f8   :  { %v2226_v60 = vmax.f32 %v2150_v44, 0.0 }
 0x3f9   :  { %v2267_v42 = vpack.c.bf16 %v2228_v59, %v2227_v55 }
 0x3fa   :  { %v2266_v37 = vpack.c.bf16 %v2226_v60, %v2225_v58 }
 0x3fc   :  { %3567 = vmatprep.mubr.bf16.mxu0 %v2266_v37 }
 0x3fd   :  { %3568 = vmatmul.mubr.bf16.gmra.mrb[160].mxu0 %v2267_v42 }
 0x402   :  { %v3525_v47 = vpop.f32.mrb[164].mxu1 }
 0x403   :  { %v2171_v23 = vadd.f32 %v3525_v47, %v4310_v45  ;;  %v2162_v25 = vpop.f32.mrb[165].mxu1 }
 0x404   :  { %v2163_v14 = vadd.f32 %v4310_v45, %v2162_v25  ;;  %v3526_v38 = vpop.f32.mrb[166].mxu1 }
 0x405   :  { %v2174_v4 = vadd.f32 %v3526_v38, %v4310_v45  ;;  %v2165_v62 = vpop.f32.mrb[167].mxu1  ;;  %v2231_v40 = vmax.f32 %v2171_v23, 0.0 }
 0x406   :  { %v2166_v32 = vadd.f32 %v4310_v45, %v2165_v62  ;;  %v2229_v0 = vmax.f32 %v2163_v14, 0.0 }
 0x407   :  { %v2232_v12 = vmax.f32 %v2174_v4, 0.0 }
 0x408   :  { %v2230_v54 = vmax.f32 %v2166_v32, 0.0 }
 0x409   :  { %v2269_v10 = vpack.c.bf16 %v2232_v12, %v2231_v40 }
 0x40a   :  { %v2268_v6 = vpack.c.bf16 %v2230_v54, %v2229_v0 }
 0x40c   :  { %3571 = vmatprep.mubr.bf16.mxu0 %v2268_v6 }
 0x40d   :  { %3572 = vmatmul.mubr.bf16.gmra.mrb[164].mxu0 %v2269_v10 }
 0x412   :  { %v3529_v57 = vpop.f32.mrb[168].mxu1 }
 0x413   :  { %v2187_v26 = vadd.f32 %v3529_v57, %v4310_v45  ;;  %v2178_v2 = vpop.f32.mrb[169].mxu1 }
 0x414   :  { %v2179_v43 = vadd.f32 %v4310_v45, %v2178_v2  ;;  %v3530_v20 = vpop.f32.mrb[170].mxu1 }
 0x415   :  { %v2190_v19 = vadd.f32 %v3530_v20, %v4310_v45  ;;  %v2181_v17 = vpop.f32.mrb[171].mxu1  ;;  %v2235_v31 = vmax.f32 %v2187_v26, 0.0 }
 0x416   :  { %v2182_v61 = vadd.f32 %v4310_v45, %v2181_v17  ;;  %v2233_v3 = vmax.f32 %v2179_v43, 0.0 }
 0x417   :  { %v2236_v11 = vmax.f32 %v2190_v19, 0.0 }
 0x418   :  { %v2234_v16 = vmax.f32 %v2182_v61, 0.0 }
 0x419   :  { %v2271_v8 = vpack.c.bf16 %v2236_v11, %v2235_v31 }
 0x41a   :  { %v2270_v41 = vpack.c.bf16 %v2234_v16, %v2233_v3 }
 0x41c   :  { %3575 = vmatprep.mubr.bf16.mxu0 %v2270_v41 }
 0x41d   :  { %3576 = vmatmul.mubr.bf16.gmra.mrb[168].mxu0 %v2271_v8 }
 0x422   :  { %v3533_v18 = vpop.f32.mrb[172].mxu1 }
 0x423   :  { %v2203_v1 = vadd.f32 %v3533_v18, %v4310_v45  ;;  %v2194_v30 = vpop.f32.mrb[173].mxu1 }
 0x424   :  { %v2195_v13 = vadd.f32 %v4310_v45, %v2194_v30  ;;  %v3534_v33 = vpop.f32.mrb[174].mxu1 }
 0x425   :  { %v2206_v36 = vadd.f32 %v3534_v33, %v4310_v45  ;;  %v2197_v24 = vpop.f32.mrb[175].mxu1  ;;  %v2239_v28 = vmax.f32 %v2203_v1, 0.0 }
 0x426   :  { %v2198_v63 = vadd.f32 %v4310_v45, %v2197_v24  ;;  %v2237_v34 = vmax.f32 %v2195_v13, 0.0 }
 0x427   :  { %v2240_v5 = vmax.f32 %v2206_v36, 0.0 }
 0x428   :  { %v2238_v35 = vmax.f32 %v2198_v63, 0.0 }
 0x429   :  { %v2273_v52 = vpack.c.bf16 %v2240_v5, %v2239_v28 }
 0x42a   :  { %v2272_v39 = vpack.c.bf16 %v2238_v35, %v2237_v34 }
 0x42c   :  { %3579 = vmatprep.mubr.bf16.mxu0 %v2272_v39 }
 0x42d   :  { %3580 = vmatmul.mubr.bf16.gmra.mrb[172].mxu0 %v2273_v52 }
 0x490   :  { %v3553_v50 = vpop.f32.mrb[144].mxu0 }
 0x491   :  { %v2362_v48 = vpop.f32.mrb[145].mxu0  ;;  %v2371_v7 = vadd.f32 %v3553_v50, %v4347_v15 }
 0x492   :  { %v3554_v27 = vpop.f32.mrb[146].mxu0  ;;  %v2363_v56 = vadd.f32 %v4347_v15, %v2362_v48 }
 0x493   :  { %v2374_v45 = vadd.f32 %v3554_v27, %v4347_v15  ;;  %v2365_v9 = vpop.f32.mrb[147].mxu0 }
 0x494   :  { %v2366_v49 = vadd.f32 %v4347_v15, %v2365_v9 }
 0x495   :  { %v2832_v51 = vpack.c.bf16 %v2374_v45, %v2371_v7 }
 0x496   :  { %v2827_v21 = vpack.c.bf16 %v2366_v49, %v2363_v56 }
 0x497   :  { %2904 = vst [vmem:[#allocation11 + $0x8] sm:$0xff] %v2832_v51  }
 0x498   :  { %2828 = vst [vmem:[#allocation11] sm:$0xff] %v2827_v21  }
 0x4a0   :  { %v3557_v53 = vpop.f32.mrb[148].mxu0 }
 0x4a1   :  { %v2378_v22 = vpop.f32.mrb[149].mxu0  ;;  %v2387_v46 = vadd.f32 %v3557_v53, %v4347_v15 }
 0x4a2   :  { %v3558_v29 = vpop.f32.mrb[150].mxu0  ;;  %v2379_v59 = vadd.f32 %v4347_v15, %v2378_v22 }
 0x4a3   :  { %v2390_v44 = vadd.f32 %v3558_v29, %v4347_v15  ;;  %v2381_v55 = vpop.f32.mrb[151].mxu0 }
 0x4a4   :  { %v2382_v58 = vadd.f32 %v4347_v15, %v2381_v55 }
 0x4a5   :  { %v2842_v60 = vpack.c.bf16 %v2390_v44, %v2387_v46 }
 0x4a6   :  { %v2837_v42 = vpack.c.bf16 %v2382_v58, %v2379_v59 }
 0x4a7   :  { %2906 = vst [vmem:[#allocation11 + $0x18] sm:$0xff] %v2842_v60  }
 0x4a8   :  { %2905 = vst [vmem:[#allocation11 + $0x10] sm:$0xff] %v2837_v42  }
 0x4b0   :  { %v3561_v37 = vpop.f32.mrb[152].mxu0 }
 0x4b1   :  { %v2394_v47 = vpop.f32.mrb[153].mxu0  ;;  %v2403_v25 = vadd.f32 %v3561_v37, %v4347_v15 }
 0x4b2   :  { %v3562_v23 = vpop.f32.mrb[154].mxu0  ;;  %v2395_v4 = vadd.f32 %v4347_v15, %v2394_v47 }
 0x4b3   :  { %v2406_v14 = vadd.f32 %v3562_v23, %v4347_v15  ;;  %v2397_v38 = vpop.f32.mrb[155].mxu0 }
 0x4b4   :  { %v2398_v62 = vadd.f32 %v4347_v15, %v2397_v38 }
 0x4b5   :  { %v2852_v32 = vpack.c.bf16 %v2406_v14, %v2403_v25 }
 0x4b6   :  { %v2847_v40 = vpack.c.bf16 %v2398_v62, %v2395_v4 }
 0x4b7   :  { %2908 = vst [vmem:[#allocation11 + $0x28] sm:$0xff] %v2852_v32  }
 0x4b8   :  { %2907 = vst [vmem:[#allocation11 + $0x20] sm:$0xff] %v2847_v40  }
 0x4c0   :  { %v3565_v12 = vpop.f32.mrb[156].mxu0 }
 0x4c1   :  { %v2410_v0 = vpop.f32.mrb[157].mxu0  ;;  %v2419_v10 = vadd.f32 %v3565_v12, %v4347_v15 }
 0x4c2   :  { %v3566_v54 = vpop.f32.mrb[158].mxu0  ;;  %v2411_v26 = vadd.f32 %v4347_v15, %v2410_v0 }
 0x4c3   :  { %v2422_v6 = vadd.f32 %v3566_v54, %v4347_v15  ;;  %v2413_v57 = vpop.f32.mrb[159].mxu0 }
 0x4c4   :  { %v2414_v2 = vadd.f32 %v4347_v15, %v2413_v57 }
 0x4c5   :  { %v2862_v43 = vpack.c.bf16 %v2422_v6, %v2419_v10 }
 0x4c6   :  { %v2857_v20 = vpack.c.bf16 %v2414_v2, %v2411_v26 }
 0x4c7   :  { %2910 = vst [vmem:[#allocation11 + $0x38] sm:$0xff] %v2862_v43  }
 0x4c8   :  { %2909 = vst [vmem:[#allocation11 + $0x30] sm:$0xff] %v2857_v20  }
 0x4d0   :  { %v3569_v19 = vpop.f32.mrb[160].mxu0 }
 0x4d1   :  { %v2426_v17 = vpop.f32.mrb[161].mxu0  ;;  %v2435_v31 = vadd.f32 %v3569_v19, %v4347_v15 }
 0x4d2   :  { %v3570_v61 = vpop.f32.mrb[162].mxu0  ;;  %v2427_v16 = vadd.f32 %v4347_v15, %v2426_v17 }
 0x4d3   :  { %v2438_v11 = vadd.f32 %v3570_v61, %v4347_v15  ;;  %v2429_v3 = vpop.f32.mrb[163].mxu0 }
 0x4d4   :  { %v2430_v8 = vadd.f32 %v4347_v15, %v2429_v3 }
 0x4d5   :  { %v2872_v41 = vpack.c.bf16 %v2438_v11, %v2435_v31 }
 0x4d6   :  { %v2867_v18 = vpack.c.bf16 %v2430_v8, %v2427_v16 }
 0x4d7   :  { %2912 = vst [vmem:[#allocation11 + $0x48] sm:$0xff] %v2872_v41  }
 0x4d8   :  { %2911 = vst [vmem:[#allocation11 + $0x40] sm:$0xff] %v2867_v18  }
 0x4e0   :  { %v3573_v1 = vpop.f32.mrb[164].mxu0 }
 0x4e1   :  { %v2442_v30 = vpop.f32.mrb[165].mxu0  ;;  %v2451_v33 = vadd.f32 %v3573_v1, %v4347_v15 }
 0x4e2   :  { %v3574_v13 = vpop.f32.mrb[166].mxu0  ;;  %v2443_v63 = vadd.f32 %v4347_v15, %v2442_v30 }
 0x4e3   :  { %v2454_v36 = vadd.f32 %v3574_v13, %v4347_v15  ;;  %v2445_v24 = vpop.f32.mrb[167].mxu0 }
 0x4e4   :  { %v2446_v28 = vadd.f32 %v4347_v15, %v2445_v24 }
 0x4e5   :  { %v2882_v5 = vpack.c.bf16 %v2454_v36, %v2451_v33 }
 0x4e6   :  { %v2877_v34 = vpack.c.bf16 %v2446_v28, %v2443_v63 }
 0x4e7   :  { %2914 = vst [vmem:[#allocation11 + $0x58] sm:$0xff] %v2882_v5  }
 0x4e8   :  { %2913 = vst [vmem:[#allocation11 + $0x50] sm:$0xff] %v2877_v34  }
 0x4f0   :  { %v3577_v35 = vpop.f32.mrb[168].mxu0 }
 0x4f1   :  { %v2458_v52 = vpop.f32.mrb[169].mxu0  ;;  %v2467_v50 = vadd.f32 %v3577_v35, %v4347_v15 }
 0x4f2   :  { %v3578_v39 = vpop.f32.mrb[170].mxu0  ;;  %v2459_v7 = vadd.f32 %v4347_v15, %v2458_v52 }
 0x4f3   :  { %v2470_v48 = vadd.f32 %v3578_v39, %v4347_v15  ;;  %v2461_v27 = vpop.f32.mrb[171].mxu0 }
 0x4f4   :  { %v2462_v45 = vadd.f32 %v4347_v15, %v2461_v27 }
 0x4f5   :  { %v2892_v9 = vpack.c.bf16 %v2470_v48, %v2467_v50 }
 0x4f6   :  { %v2887_v56 = vpack.c.bf16 %v2462_v45, %v2459_v7 }
 0x4f7   :  { %2916 = vst [vmem:[#allocation11 + $0x68] sm:$0xff] %v2892_v9  }
 0x4f8   :  { %2915 = vst [vmem:[#allocation11 + $0x60] sm:$0xff] %v2887_v56  }
 0x500   :  { %v3581_v49 = vpop.f32.mrb[172].mxu0 }
 0x501   :  { %v2474_v51 = vpop.f32.mrb[173].mxu0  ;;  %v2483_v53 = vadd.f32 %v3581_v49, %v4347_v15 }
 0x502   :  { %v3582_v21 = vpop.f32.mrb[174].mxu0  ;;  %v2475_v46 = vadd.f32 %v4347_v15, %v2474_v51 }
 0x503   :  { %v2486_v22 = vadd.f32 %v3582_v21, %v4347_v15  ;;  %v2477_v29 = vpop.f32.mrb[175].mxu0 }
 0x504   :  { %v2478_v44 = vadd.f32 %v4347_v15, %v2477_v29 }
 0x505   :  { %v2902_v55 = vpack.c.bf16 %v2486_v22, %v2483_v53 }
 0x506   :  { %v2897_v59 = vpack.c.bf16 %v2478_v44, %v2475_v46 }
 0x507   :  { %2918 = vst [vmem:[#allocation11 + $0x78] sm:$0xff] %v2902_v55  }
 0x508   :  { %2917 = vst [vmem:[#allocation11 + $0x70] sm:$0xff] %v2897_v59  }
 0x509   :  { %3817 = shalt.err (!%p3814_p2)
}
 0x50a   :  { %s3818_s15 = scalar_lea.hbm %s4405_s9, 2048 }
 0x50b   :  { %p3819_p3 = scmp.ne.s32.totalorder %s4405_s9, %s3818_s15  ;;  %p3822_p4 = scmp.lt.u32.totalorder %s3818_s15, %s4405_s9 }
 0x50d   :  { %p3824_p5 = pnand %p3822_p4, %p3819_p3 }
 0x50f   :  { %3827 = shalt.err (!%p3824_p5)
}
 0x510   :  { %2660 = dma.vmem_to_hbm [thread:$0]  %s2655_s13, 2048, %s4405_s9, [#allocation4], %s3837_s19, %s3837_s19, %s3838_s20  }
 0x511   :  { %3834 = dma.done.wait [#allocation4], 2048  }
 0x512   :  { %3835 = vsyncadd [#allocation4], 4294965248 }
 0x513   :  { %2664 = vsyncpa [#allocation3], 1 }
 0x514   :  { %2665 = vsyncpa [#allocation6], 1 }
 0x515   :  { %2666 = vsyncpa [#allocation9], 1 }
 0x516   :  { %2667 = vsyncpa [#allocation4], 1 }

</bundles_post_ra>
